<compile_context>
chip_gen: v6e
topology: v6e:2x2x1
jax: 0.10.0
libtpu: 0.0.40
codegen_flags: <defaults>
</compile_context>

<pallas_src>
import functools

import jax
import jax.numpy as jnp
from jax.experimental import pallas as pl
from jax.experimental.pallas import tpu as pltpu

KH = KW = 5       # Conv2d kernel size
STRIDE = 2
PAD = 2
EPS = 1e-5        # nn.InstanceNorm2d default


def _downsample_kernel(x_ref, w_ref, o_ref, patch_ref, *, ho, wo, cin, cout):
    """One batch element: implicit-GEMM conv (single deep dot) + fused IN + GLU.

    x_ref:     (He, We, 4*Cin) bf16   parity-concat zero-padded input; channel
                                      layout (row_parity, col_parity, cin)
    w_ref:     (36*Cin, Cout)  bf16   rows ordered (a, b, rp, cp, cin); rows
                                      with 2a+rp > 4 or 2b+cp > 4 are zero
    o_ref:     (Ho*Wo, Cout//2) f32   InstanceNorm+GLU output (HW-major)
    patch_ref: (Ho*Wo, 36*Cin) bf16   VMEM im2col scratch
    """
    cg = 4 * cin
    m = ho * wo

    # Build the im2col scratch: 9 contiguous windows, lane-aligned column
    # offsets (cg is a multiple of 128 for Cin >= 32).
    for a in range(3):
        for b in range(3):
            k0 = (a * 3 + b) * cg
            win = x_ref[a:a + ho, b:b + wo, :]           # (Ho, Wo, 4*Cin) bf16
            patch_ref[:, k0:k0 + cg] = win.reshape(m, cg)

    # Single deep matmul: K = 36*Cin, N = Cout, f32 accumulation on the MXU.
    acc = jnp.dot(patch_ref[...], w_ref[...],
                  preferred_element_type=jnp.float32)     # (M, Cout) f32

    # InstanceNorm2d (biased variance, eps=1e-5, affine=False): stats over H*W.
    # One-pass sum / sum-of-squares in f32 (conv outputs are near zero-mean, so
    # cancellation is benign; guard var >= 0 anyway).
    inv_m = jnp.float32(1.0 / m)
    mean = jnp.sum(acc, axis=0, keepdims=True) * inv_m
    var = jnp.maximum(
        jnp.sum(acc * acc, axis=0, keepdims=True) * inv_m - mean * mean, 0.0)
    xn = (acc - mean) * jax.lax.rsqrt(var + EPS)

    # GLU over the channel axis: first half * sigmoid(second half).
    half = cout // 2
    o_ref[...] = xn[:, :half] * jax.nn.sigmoid(xn[:, half:])


def downsample_block(x_nchw, w_oihw):
    """Forward pass of DownSampleBlock.

    x_nchw: (B, Cin, H, W) float32
    w_oihw: (Cout, Cin, 5, 5) float32 (PyTorch Conv2d layout, bias=False)
    returns (B, Cout//2, Ho, Wo) float32
    """
    b, cin, h, w = x_nchw.shape
    cout = w_oihw.shape[0]
    assert cout % 2 == 0, "GLU needs an even channel count"
    ho = (h + 2 * PAD - KH) // STRIDE + 1
    wo = (w + 2 * PAD - KW) // STRIDE + 1

    # ---- 1x layout plumbing in plain JAX (no HBM im2col blow-up) ----
    # NCHW -> NHWC, zero-pad to even extents, then split row/col parity and
    # concatenate the 4 parity planes along channels: with stride 2, every
    # tap group (a, b) = (di//2, dj//2) becomes one contiguous window.
    x = jnp.transpose(x_nchw, (0, 2, 3, 1))                      # NHWC
    hp, wp = h + 2 * PAD, w + 2 * PAD
    hp2, wp2 = hp + (hp % 2), wp + (wp % 2)                      # even extents
    x = jnp.pad(x, ((0, 0),
                    (PAD, PAD + (hp2 - hp)),
                    (PAD, PAD + (wp2 - wp)),
                    (0, 0)))
    he, we = hp2 // 2, wp2 // 2
    assert he == ho + 2 and we == wo + 2
    x = x.reshape(b, he, 2, we, 2, cin)
    x = jnp.transpose(x, (0, 1, 3, 2, 4, 5)).reshape(b, he, we, 4 * cin)
    x = x.astype(jnp.bfloat16)           # bf16 activations: half the DMA bytes

    # Weight -> (36*Cin, Cout) bf16, rows ordered (a, b, rp, cp, cin).
    # Pad the 5x5 kernel to 6x6 with zeros so the non-existent taps di=5 / dj=5
    # become zero rows; the single big matmul then computes the exact conv.
    wpad = jnp.pad(w_oihw, ((0, 0), (0, 0), (0, 1), (0, 1)))     # (Co,Ci,6,6)
    wr = wpad.reshape(cout, cin, 3, 2, 3, 2)                     # (Co,Ci,a,rp,b,cp)
    wr = jnp.transpose(wr, (2, 4, 3, 5, 1, 0))                   # (a,b,rp,cp,Ci,Co)
    wmat = wr.reshape(36 * cin, cout).astype(jnp.bfloat16)

    kernel = functools.partial(_downsample_kernel,
                               ho=ho, wo=wo, cin=cin, cout=cout)

    out = pl.pallas_call(
        kernel,
        out_shape=jax.ShapeDtypeStruct((b, ho * wo, cout // 2), jnp.float32),
        grid_spec=pltpu.PrefetchScalarGridSpec(
            num_scalar_prefetch=0,
            grid=(b,),
            in_specs=[
                pl.BlockSpec((None, he, we, 4 * cin),
                             lambda i: (i, 0, 0, 0)),
                # Constant weight tile (same block every grid step).
                pl.BlockSpec((36 * cin, cout), lambda i: (0, 0)),
            ],
            out_specs=pl.BlockSpec((None, ho * wo, cout // 2),
                                   lambda i: (i, 0, 0)),
            scratch_shapes=[
                pltpu.VMEM((ho * wo, 36 * cin), jnp.bfloat16),   # im2col scratch
            ],
        ),
        compiler_params=pltpu.CompilerParams(
            dimension_semantics=("parallel",),
            vmem_limit_bytes=32 * 1024 * 1024,
        ),
    )(x, wmat)
    # TODO(synk): for large Ho*Wo (real spectrograms) add an "arbitrary" spatial
    # grid axis with partial sum/sumsq stats + a finalize pass (needed on v7x's
    # 64 MiB VMEM), optionally a Cout-parallel axis with GLU-paired channel
    # packing for 2-TC v7x, and single-buffer the constant weight block
    # (pipeline_mode=pl.Buffered(1)) to reclaim its second VMEM buffer.

    out = out.reshape(b, ho, wo, cout // 2)
    return jnp.transpose(out, (0, 3, 1, 2))                      # back to NCHW


def _reference(x_nchw, w_oihw):
    """Plain-JAX reference using the same bf16-operand / f32-accum contract."""
    y = jax.lax.conv_general_dilated(
        x_nchw.astype(jnp.bfloat16), w_oihw.astype(jnp.bfloat16),
        window_strides=(STRIDE, STRIDE),
        padding=((PAD, PAD), (PAD, PAD)),
        dimension_numbers=("NCHW", "OIHW", "NCHW"),
        preferred_element_type=jnp.float32)
    mean = jnp.mean(y, axis=(2, 3), keepdims=True)
    var = jnp.mean(jnp.square(y - mean), axis=(2, 3), keepdims=True)
    yn = (y - mean) * jax.lax.rsqrt(var + EPS)
    c = yn.shape[1] // 2
    return yn[:, :c] * jax.nn.sigmoid(yn[:, c:])


if __name__ == "__main__":
    key = jax.random.PRNGKey(0)
    kx, kweight = jax.random.split(key)
    # DownSampleBlock(64, 256) — first downsample block of the CycleGAN-VC2
    # discriminator.  GLU output = 128 channels -> lane-dense output stores.
    B, CIN, H, W, COUT = 2, 64, 16, 16, 256
    x = jax.random.normal(kx, (B, CIN, H, W), jnp.float32)
    wgt = jax.random.normal(kweight, (COUT, CIN, KH, KW), jnp.float32)
    wgt = wgt / jnp.sqrt(CIN * KH * KW)

    fwd = jax.jit(downsample_block)
    out = fwd(x, wgt)
    jax.block_until_ready(out)

    assert out.shape == (B, COUT // 2, H // 2, W // 2), out.shape
    assert bool(jnp.all(jnp.isfinite(out)))

    ref = _reference(x, wgt)
    err = float(jnp.max(jnp.abs(out - ref)))
    assert err < 1e-2, f"max abs err vs reference: {err}"
    print("KERNEL_OK")
</pallas_src>

<mosaic_0001>
module attributes {stable_mosaic.version = 11 : i64} {
  func.func @_downsample_kernel(%arg0: i32, %arg1: memref<1x10x10x256xbf16, #tpu.memory_space<vmem>>, %arg2: memref<2304x256xbf16, #tpu.memory_space<vmem>>, %arg3: memref<1x64x128xf32, #tpu.memory_space<vmem>>, %arg4: memref<64x2304xbf16, #tpu.memory_space<vmem>>) attributes {dimension_semantics = [#tpu.dimension_semantics<parallel>], iteration_bounds = array<i64: 2>, scalar_prefetch = 0 : i64, scratch_operands = 1 : i64, tpu.core_type = #tpu.core_type<tc>, window_params = [{transform_indices = @transform_0, window_bounds = array<i64: 1, 10, 10, 256>}, {pipeline_mode = #tpu.pipeline_mode<synchronous>, transform_indices = @transform_1, window_bounds = array<i64: 2304, 256>}, {transform_indices = @transform_2, window_bounds = array<i64: 1, 64, 128>}]} {
    %c0 = arith.constant 0 : index
    %c0_0 = arith.constant 0 : index
    %c0_1 = arith.constant 0 : index
    %c0_2 = arith.constant 0 : index
    %0 = vector.load %arg1[%c0, %c0_0, %c0_1, %c0_2] : memref<1x10x10x256xbf16, #tpu.memory_space<vmem>>, vector<1x8x8x256xbf16>
    %1 = vector.shape_cast %0 : vector<1x8x8x256xbf16> to vector<8x8x256xbf16>
    %2 = vector.shape_cast %1 : vector<8x8x256xbf16> to vector<64x256xbf16>
    %c0_3 = arith.constant 0 : index
    %c0_4 = arith.constant 0 : index
    %3 = vector.load %arg4[%c0_3, %c0_4] : memref<64x2304xbf16, #tpu.memory_space<vmem>>, vector<64x256xbf16>
    tpu.vector_store %arg4[%c0_3, %c0_4], %2 {strides = array<i32>} : memref<64x2304xbf16, #tpu.memory_space<vmem>>, vector<64x256xbf16>,
    %c0_5 = arith.constant 0 : index
    %c0_6 = arith.constant 0 : index
    %c1 = arith.constant 1 : index
    %c0_7 = arith.constant 0 : index
    %4 = vector.load %arg1[%c0_5, %c0_6, %c1, %c0_7] : memref<1x10x10x256xbf16, #tpu.memory_space<vmem>>, vector<1x8x8x256xbf16>
    %5 = vector.shape_cast %4 : vector<1x8x8x256xbf16> to vector<8x8x256xbf16>
    %6 = vector.shape_cast %5 : vector<8x8x256xbf16> to vector<64x256xbf16>
    %c0_8 = arith.constant 0 : index
    %c256 = arith.constant 256 : index
    %7 = vector.load %arg4[%c0_8, %c256] : memref<64x2304xbf16, #tpu.memory_space<vmem>>, vector<64x256xbf16>
    tpu.vector_store %arg4[%c0_8, %c256], %6 {strides = array<i32>} : memref<64x2304xbf16, #tpu.memory_space<vmem>>, vector<64x256xbf16>,
    %c0_9 = arith.constant 0 : index
    %c0_10 = arith.constant 0 : index
    %c2 = arith.constant 2 : index
    %c0_11 = arith.constant 0 : index
    %8 = vector.load %arg1[%c0_9, %c0_10, %c2, %c0_11] : memref<1x10x10x256xbf16, #tpu.memory_space<vmem>>, vector<1x8x8x256xbf16>
    %9 = vector.shape_cast %8 : vector<1x8x8x256xbf16> to vector<8x8x256xbf16>
    %10 = vector.shape_cast %9 : vector<8x8x256xbf16> to vector<64x256xbf16>
    %c0_12 = arith.constant 0 : index
    %c512 = arith.constant 512 : index
    %11 = vector.load %arg4[%c0_12, %c512] : memref<64x2304xbf16, #tpu.memory_space<vmem>>, vector<64x256xbf16>
    tpu.vector_store %arg4[%c0_12, %c512], %10 {strides = array<i32>} : memref<64x2304xbf16, #tpu.memory_space<vmem>>, vector<64x256xbf16>,
    %c0_13 = arith.constant 0 : index
    %c1_14 = arith.constant 1 : index
    %c0_15 = arith.constant 0 : index
    %c0_16 = arith.constant 0 : index
    %12 = vector.load %arg1[%c0_13, %c1_14, %c0_15, %c0_16] : memref<1x10x10x256xbf16, #tpu.memory_space<vmem>>, vector<1x8x8x256xbf16>
    %13 = vector.shape_cast %12 : vector<1x8x8x256xbf16> to vector<8x8x256xbf16>
    %14 = vector.shape_cast %13 : vector<8x8x256xbf16> to vector<64x256xbf16>
    %c0_17 = arith.constant 0 : index
    %c768 = arith.constant 768 : index
    %15 = vector.load %arg4[%c0_17, %c768] : memref<64x2304xbf16, #tpu.memory_space<vmem>>, vector<64x256xbf16>
    tpu.vector_store %arg4[%c0_17, %c768], %14 {strides = array<i32>} : memref<64x2304xbf16, #tpu.memory_space<vmem>>, vector<64x256xbf16>,
    %c0_18 = arith.constant 0 : index
    %c1_19 = arith.constant 1 : index
    %c1_20 = arith.constant 1 : index
    %c0_21 = arith.constant 0 : index
    %16 = vector.load %arg1[%c0_18, %c1_19, %c1_20, %c0_21] : memref<1x10x10x256xbf16, #tpu.memory_space<vmem>>, vector<1x8x8x256xbf16>
    %17 = vector.shape_cast %16 : vector<1x8x8x256xbf16> to vector<8x8x256xbf16>
    %18 = vector.shape_cast %17 : vector<8x8x256xbf16> to vector<64x256xbf16>
    %c0_22 = arith.constant 0 : index
    %c1024 = arith.constant 1024 : index
    %19 = vector.load %arg4[%c0_22, %c1024] : memref<64x2304xbf16, #tpu.memory_space<vmem>>, vector<64x256xbf16>
    tpu.vector_store %arg4[%c0_22, %c1024], %18 {strides = array<i32>} : memref<64x2304xbf16, #tpu.memory_space<vmem>>, vector<64x256xbf16>,
    %c0_23 = arith.constant 0 : index
    %c1_24 = arith.constant 1 : index
    %c2_25 = arith.constant 2 : index
    %c0_26 = arith.constant 0 : index
    %20 = vector.load %arg1[%c0_23, %c1_24, %c2_25, %c0_26] : memref<1x10x10x256xbf16, #tpu.memory_space<vmem>>, vector<1x8x8x256xbf16>
    %21 = vector.shape_cast %20 : vector<1x8x8x256xbf16> to vector<8x8x256xbf16>
    %22 = vector.shape_cast %21 : vector<8x8x256xbf16> to vector<64x256xbf16>
    %c0_27 = arith.constant 0 : index
    %c1280 = arith.constant 1280 : index
    %23 = vector.load %arg4[%c0_27, %c1280] : memref<64x2304xbf16, #tpu.memory_space<vmem>>, vector<64x256xbf16>
    tpu.vector_store %arg4[%c0_27, %c1280], %22 {strides = array<i32>} : memref<64x2304xbf16, #tpu.memory_space<vmem>>, vector<64x256xbf16>,
    %c0_28 = arith.constant 0 : index
    %c2_29 = arith.constant 2 : index
    %c0_30 = arith.constant 0 : index
    %c0_31 = arith.constant 0 : index
    %24 = vector.load %arg1[%c0_28, %c2_29, %c0_30, %c0_31] : memref<1x10x10x256xbf16, #tpu.memory_space<vmem>>, vector<1x8x8x256xbf16>
    %25 = vector.shape_cast %24 : vector<1x8x8x256xbf16> to vector<8x8x256xbf16>
    %26 = vector.shape_cast %25 : vector<8x8x256xbf16> to vector<64x256xbf16>
    %c0_32 = arith.constant 0 : index
    %c1536 = arith.constant 1536 : index
    %27 = vector.load %arg4[%c0_32, %c1536] : memref<64x2304xbf16, #tpu.memory_space<vmem>>, vector<64x256xbf16>
    tpu.vector_store %arg4[%c0_32, %c1536], %26 {strides = array<i32>} : memref<64x2304xbf16, #tpu.memory_space<vmem>>, vector<64x256xbf16>,
    %c0_33 = arith.constant 0 : index
    %c2_34 = arith.constant 2 : index
    %c1_35 = arith.constant 1 : index
    %c0_36 = arith.constant 0 : index
    %28 = vector.load %arg1[%c0_33, %c2_34, %c1_35, %c0_36] : memref<1x10x10x256xbf16, #tpu.memory_space<vmem>>, vector<1x8x8x256xbf16>
    %29 = vector.shape_cast %28 : vector<1x8x8x256xbf16> to vector<8x8x256xbf16>
    %30 = vector.shape_cast %29 : vector<8x8x256xbf16> to vector<64x256xbf16>
    %c0_37 = arith.constant 0 : index
    %c1792 = arith.constant 1792 : index
    %31 = vector.load %arg4[%c0_37, %c1792] : memref<64x2304xbf16, #tpu.memory_space<vmem>>, vector<64x256xbf16>
    tpu.vector_store %arg4[%c0_37, %c1792], %30 {strides = array<i32>} : memref<64x2304xbf16, #tpu.memory_space<vmem>>, vector<64x256xbf16>,
    %c0_38 = arith.constant 0 : index
    %c2_39 = arith.constant 2 : index
    %c2_40 = arith.constant 2 : index
    %c0_41 = arith.constant 0 : index
    %32 = vector.load %arg1[%c0_38, %c2_39, %c2_40, %c0_41] : memref<1x10x10x256xbf16, #tpu.memory_space<vmem>>, vector<1x8x8x256xbf16>
    %33 = vector.shape_cast %32 : vector<1x8x8x256xbf16> to vector<8x8x256xbf16>
    %34 = vector.shape_cast %33 : vector<8x8x256xbf16> to vector<64x256xbf16>
    %c0_42 = arith.constant 0 : index
    %c2048 = arith.constant 2048 : index
    %35 = vector.load %arg4[%c0_42, %c2048] : memref<64x2304xbf16, #tpu.memory_space<vmem>>, vector<64x256xbf16>
    tpu.vector_store %arg4[%c0_42, %c2048], %34 {strides = array<i32>} : memref<64x2304xbf16, #tpu.memory_space<vmem>>, vector<64x256xbf16>,
    %c0_43 = arith.constant 0 : index
    %c0_44 = arith.constant 0 : index
    %36 = vector.load %arg4[%c0_43, %c0_44] : memref<64x2304xbf16, #tpu.memory_space<vmem>>, vector<64x2304xbf16>
    %c0_45 = arith.constant 0 : index
    %c0_46 = arith.constant 0 : index
    %37 = vector.load %arg2[%c0_45, %c0_46] : memref<2304x256xbf16, #tpu.memory_space<vmem>>, vector<2304x256xbf16>
    %cst = arith.constant dense<0.000000e+00> : vector<64x256xf32>
    %38 = tpu.matmul %36, %37, %cst {dimension_numbers = #tpu.dot_dimension_numbers<[1], [0], [0], [1], [0, 0, 1, 1], [], []>} : vector<64x2304xbf16>, vector<2304x256xbf16>, vector<64x256xf32> -> vector<64x256xf32>
    %cst_47 = arith.constant dense<0.000000e+00> : vector<256xf32>
    %39 = vector.multi_reduction <add>, %38, %cst_47 [0] : vector<64x256xf32> to vector<256xf32>
    %40 = vector.shape_cast %39 : vector<256xf32> to vector<1x256xf32>
    %cst_48 = arith.constant 1.562500e-02 : f32
    %41 = vector.broadcast %cst_48 : f32 to vector<1x256xf32>
    %42 = arith.mulf %40, %41 : vector<1x256xf32>
    %43 = arith.mulf %38, %38 : vector<64x256xf32>
    %cst_49 = arith.constant dense<0.000000e+00> : vector<256xf32>
    %44 = vector.multi_reduction <add>, %43, %cst_49 [0] : vector<64x256xf32> to vector<256xf32>
    %45 = vector.shape_cast %44 : vector<256xf32> to vector<1x256xf32>
    %cst_50 = arith.constant 1.562500e-02 : f32
    %46 = vector.broadcast %cst_50 : f32 to vector<1x256xf32>
    %47 = arith.mulf %45, %46 : vector<1x256xf32>
    %48 = arith.mulf %42, %42 : vector<1x256xf32>
    %49 = arith.subf %47, %48 : vector<1x256xf32>
    %cst_51 = arith.constant 0.000000e+00 : f32
    %50 = vector.broadcast %cst_51 : f32 to vector<1x256xf32>
    %51 = arith.maximumf %49, %50 : vector<1x256xf32>
    %52 = vector.broadcast %42 : vector<1x256xf32> to vector<64x256xf32>
    %53 = arith.subf %38, %52 : vector<64x256xf32>
    %cst_52 = arith.constant 9.99999974E-6 : f32
    %54 = vector.broadcast %cst_52 : f32 to vector<1x256xf32>
    %55 = arith.addf %51, %54 : vector<1x256xf32>
    %56 = math.rsqrt %55 : vector<1x256xf32>
    %57 = vector.broadcast %56 : vector<1x256xf32> to vector<64x256xf32>
    %58 = arith.mulf %53, %57 : vector<64x256xf32>
    %59 = vector.extract_strided_slice %58 {offsets = [0, 0], sizes = [64, 128], strides = [1, 1]} : vector<64x256xf32> to vector<64x128xf32>
    %60 = vector.extract_strided_slice %58 {offsets = [0, 128], sizes = [64, 128], strides = [1, 1]} : vector<64x256xf32> to vector<64x128xf32>
    %61 = arith.negf %60 : vector<64x128xf32>
    %62 = math.exp %61 : vector<64x128xf32>
    %cst_53 = arith.constant 1.000000e+00 : f32
    %63 = vector.broadcast %cst_53 : f32 to vector<64x128xf32>
    %64 = arith.addf %63, %62 : vector<64x128xf32>
    %65 = arith.divf %63, %64 : vector<64x128xf32>
    %66 = arith.mulf %59, %65 : vector<64x128xf32>
    %c0_54 = arith.constant 0 : index
    %c0_55 = arith.constant 0 : index
    %c0_56 = arith.constant 0 : index
    %67 = vector.load %arg3[%c0_54, %c0_55, %c0_56] : memref<1x64x128xf32, #tpu.memory_space<vmem>>, vector<1x64x128xf32>
    %68 = vector.shape_cast %67 : vector<1x64x128xf32> to vector<64x128xf32>
    %69 = vector.shape_cast %66 : vector<64x128xf32> to vector<1x64x128xf32>
    tpu.vector_store %arg3[%c0_54, %c0_55, %c0_56], %69 {strides = array<i32>} : memref<1x64x128xf32, #tpu.memory_space<vmem>>, vector<1x64x128xf32>,
    return
  }
  func.func @transform_0(%arg0: i32) -> (i32, i32, i32, i32) {
    %c0_i32 = arith.constant 0 : i32
    %c0_i32_0 = arith.constant 0 : i32
    %c0_i32_1 = arith.constant 0 : i32
    %c0_i32_2 = arith.constant 0 : i32
    return %arg0, %c0_i32, %c0_i32_0, %c0_i32_1 : i32, i32, i32, i32
  }
  func.func @transform_1(%arg0: i32) -> (i32, i32) {
    %c0_i32 = arith.constant 0 : i32
    %c0_i32_0 = arith.constant 0 : i32
    %c0_i32_1 = arith.constant 0 : i32
    return %c0_i32, %c0_i32_0 : i32, i32
  }
  func.func @transform_2(%arg0: i32) -> (i32, i32, i32) {
    %c0_i32 = arith.constant 0 : i32
    %c0_i32_0 = arith.constant 0 : i32
    %c0_i32_1 = arith.constant 0 : i32
    return %arg0, %c0_i32, %c0_i32_0 : i32, i32, i32
  }
}

</mosaic_0001>

<bundles_post_ra>
// kernel: downsample_block.1
= control target key start
LH: loop header
LB: loop body
LE: loop exit
PB: predicated region body
PF: predicated region fallthrough
CT: control target
= control target key end

     0   :  { %7 = vsyncpa [#allocation4], 0  ;;  %s6744_s0 = inlined_call_operand.vmem [shape: bf16[2,10,10,256], index: 0, kind: input, shape index: {}]   ;;  %s6745_s1 = inlined_call_operand.vmem [shape: bf16[2304,256], index: 1, kind: input, shape index: {}]   ;;  %s6746_s2 = inlined_call_operand.hbm [shape: f32[2,64,128], index: 2, kind: output, shape index: {}]  }
   0x1   :  { %9 = vsyncpa [#allocation4 + $0x1], 0  ;;  %s5071_s9 = smov 0   ;;  %s5073_s10 = smov 0  }
   0x2   :  { %s5075_s11 = smov 0   ;;  %s5077_s12 = smov 0  }
   0x3 LB: > { %s5092_s13 = sadd.s32 4294967295, %s5051_s12   ;;  %s3941_s14 = sadd.s32 4294967294, %s5051_s12   ;;  %s5051_s12 = sphi %s5077_s12, %s6760_s12   ;;  %s5047_s11 = sphi %s5075_s11, %s6759_s11   ;;  %s5043_s10 = sphi %s5073_s10, %s6758_s10   ;;  %s5039_s9 = sphi %s5071_s9, %s6757_s9  }
   0x4   : > { %s5096_s15 = sadd.s32 1, %s5051_s12   ;;  %s69_s16 = sadd.s32 1, %s5047_s11 }
   0x5   : > { %s66_s17 = ssub.s32 %s5051_s12, %s5096_s15  ;;  %p79_p0 = scmp.ne.s32.totalorder %s5047_s11, %s5043_s10 }
   0x6   : > { %p67_p1 = scmp.eq.s32.totalorder %s66_s17, 0  ;;  %p80_p2 = scmp.eq.s32.totalorder %s5092_s13, 1 }
   0x7   : > { %p85_p3 = scmp.ne.s32.totalorder %s5043_s10, %s5039_s9  ;;  %p86_p4 = scmp.eq.s32.totalorder %s3941_s14, 1 }
   0x8   : > { %s5107_s18 = scalar_select %p67_p1, %s5047_s11, %s69_s16  }
   0x9   : > { %p5109_p5 = por %p80_p2, %p79_p0  ;;  %p5113_p6 = por %p86_p4, %p85_p3 }
   0xa   : > { %p3944_p7 = scmp.ge.s32.totalorder %s5051_s12, 1  ;;  %p115_p8 = scmp.lt.s32.totalorder %s5051_s12, 3 }
   0xc   : > { %p116_p9 = pnand %p3944_p7, %p115_p8 }
   0xe   : > { %119 = sbr.rel (%p116_p9) target bundleno = 653 (0x28d), region = 28 }
  0x13   : > { %v4499_v0 = vld [vmem:[%s6745_s1 + $0x74] ss:$8 sps:$4 sm:$0xff]   ;;  %v4503_v2 = vld [vmem:[%s6745_s1 + $0x70] ss:$8 sps:$4 sm:$0xff]   ;;  %v4505_v4 = vld [vmem:[%s6745_s1 + $0x64] ss:$8 sps:$4 sm:$0xff]  }
  0x14   : > { %v4501_v1 = vld [vmem:[%s6745_s1 + $0x174] ss:$8 sps:$4 sm:$0xff]   ;;  %3030 = vmatprep.subr.bf16.mxu0 %v4499_v0  ;;  %v4504_v3 = vld [vmem:[%s6745_s1 + $0x170] ss:$8 sps:$4 sm:$0xff]   ;;  %v4507_v5 = vld [vmem:[%s6745_s1 + $0x164] ss:$8 sps:$4 sm:$0xff]  }
  0x15   : > { %3103 = vmatprep.subr.bf16.mxu1 %v4501_v1  ;;  %3031 = vmatpush1.bf16.msra.mxu0 %v4503_v2  ;;  %v4509_v6 = vld [vmem:[%s6745_s1 + $0x60] ss:$8 sps:$4 sm:$0xff]   ;;  %v4511_v8 = vld [vmem:[%s6745_s1 + $0x54] ss:$8 sps:$4 sm:$0xff]   ;;  %v4515_v10 = vld [vmem:[%s6745_s1 + $0x50] ss:$8 sps:$4 sm:$0xff]  }
  0x16   : > { %3104 = vmatpush1.bf16.msra.mxu1 %v4504_v3  ;;  %3032 = vmatprep.subr.bf16.mxu0 %v4505_v4  ;;  %v4510_v7 = vld [vmem:[%s6745_s1 + $0x160] ss:$8 sps:$4 sm:$0xff]   ;;  %v4513_v9 = vld [vmem:[%s6745_s1 + $0x154] ss:$8 sps:$4 sm:$0xff]   ;;  %v4516_v11 = vld [vmem:[%s6745_s1 + $0x150] ss:$8 sps:$4 sm:$0xff]  }
  0x17   : > { %3105 = vmatprep.subr.bf16.mxu1 %v4507_v5  ;;  %v4517_v12 = vld [vmem:[%s6745_s1 + $0x44] ss:$8 sps:$4 sm:$0xff]   ;;  %v4521_v14 = vld [vmem:[%s6745_s1 + $0x40] ss:$8 sps:$4 sm:$0xff]   ;;  %v4523_v16 = vld [vmem:[%s6745_s1 + $0x34] ss:$8 sps:$4 sm:$0xff]  }
  0x18   : > { %v4519_v13 = vld [vmem:[%s6745_s1 + $0x144] ss:$8 sps:$4 sm:$0xff]   ;;  %v4522_v15 = vld [vmem:[%s6745_s1 + $0x140] ss:$8 sps:$4 sm:$0xff]   ;;  %v4525_v17 = vld [vmem:[%s6745_s1 + $0x134] ss:$8 sps:$4 sm:$0xff]  }
  0x19   : > { %3033 = vmatpush1.bf16.msra.mxu0 %v4509_v6  ;;  %v4527_v18 = vld [vmem:[%s6745_s1 + $0x30] ss:$8 sps:$4 sm:$0xff]   ;;  %v4529_v20 = vld [vmem:[%s6745_s1 + $0x24] ss:$8 sps:$4 sm:$0xff]   ;;  %v4533_v22 = vld [vmem:[%s6745_s1 + $0x20] ss:$8 sps:$4 sm:$0xff]  }
  0x1a   : > { %3106 = vmatpush1.bf16.msra.mxu1 %v4510_v7  ;;  %3034 = vmatprep.subr.bf16.mxu0 %v4511_v8  ;;  %v4528_v19 = vld [vmem:[%s6745_s1 + $0x130] ss:$8 sps:$4 sm:$0xff]   ;;  %v4531_v21 = vld [vmem:[%s6745_s1 + $0x124] ss:$8 sps:$4 sm:$0xff]   ;;  %v4534_v23 = vld [vmem:[%s6745_s1 + $0x120] ss:$8 sps:$4 sm:$0xff]  }
  0x1b   : > { %3107 = vmatprep.subr.bf16.mxu1 %v4513_v9  ;;  %v4535_v24 = vld [vmem:[%s6745_s1 + $0x14] ss:$8 sps:$4 sm:$0xff]   ;;  %v4539_v26 = vld [vmem:[%s6745_s1 + $0x10] ss:$8 sps:$4 sm:$0xff]   ;;  %v4541_v28 = vld [vmem:[%s6745_s1 + $0x4] ss:$8 sps:$4 sm:$0xff]  }
  0x1c   : > { %v4537_v25 = vld [vmem:[%s6745_s1 + $0x114] ss:$8 sps:$4 sm:$0xff]   ;;  %v4540_v27 = vld [vmem:[%s6745_s1 + $0x110] ss:$8 sps:$4 sm:$0xff]   ;;  %v4543_v29 = vld [vmem:[%s6745_s1 + $0x104] ss:$8 sps:$4 sm:$0xff]  }
  0x1d   : > { %3035 = vmatpush1.bf16.msra.mxu0 %v4515_v10  ;;  %v4545_v30 = vld [vmem:[%s6745_s1] ss:$8 sps:$4 sm:$0xff]   ;;  %p137_p10 = scmp.lt.s32.totalorder %s5092_s13, 1  ;;  %v4547_v32 = vld [vmem:[%s6745_s1 + $0xf4] ss:$8 sps:$4 sm:$0xff]   ;;  %vm337_vm3 = vcmask 1042432  }
  0x1e   : > { %3108 = vmatpush1.bf16.msra.mxu1 %v4516_v11  ;;  %3036 = vmatprep.subr.bf16.mxu0 %v4517_v12  ;;  %v4546_v31 = vld [vmem:[%s6745_s1 + $0x100] ss:$8 sps:$4 sm:$0xff]   ;;  %v4549_v33 = vld [vmem:[%s6745_s1 + $0x1f4] ss:$8 sps:$4 sm:$0xff]   ;;  %v4551_v34 = vld [vmem:[%s6745_s1 + $0xf0] ss:$8 sps:$4 sm:$0xff]  }
  0x1f   : > { %3109 = vmatprep.subr.bf16.mxu1 %v4519_v13  ;;  %v4552_v35 = vld [vmem:[%s6745_s1 + $0x1f0] ss:$8 sps:$4 sm:$0xff]   ;;  %s138_s8 = scalar_select %p137_p10, %s5092_s13, 1  ;;  %v4553_v36 = vld [vmem:[%s6745_s1 + $0xe4] ss:$8 sps:$4 sm:$0xff]   ;;  %vm338_vm4 = vcmask 1046532  }
  0x20   : > { %v4555_v37 = vld [vmem:[%s6745_s1 + $0x1e4] ss:$8 sps:$4 sm:$0xff]   ;;  %v4557_v38 = vld [vmem:[%s6745_s1 + $0xe0] ss:$8 sps:$4 sm:$0xff]   ;;  %v4559_v40 = vld [vmem:[%s6745_s1 + $0xd4] ss:$8 sps:$4 sm:$0xff]  }
  0x21   : > { %3037 = vmatpush1.bf16.msra.mxu0 %v4521_v14  ;;  %s4457_s24 = smul.u32 160, %s138_s8  ;;  %v4558_v39 = vld [vmem:[%s6745_s1 + $0x1e0] ss:$8 sps:$4 sm:$0xff]   ;;  %v4561_v41 = vld [vmem:[%s6745_s1 + $0x1d4] ss:$8 sps:$4 sm:$0xff]   ;;  %vm5498_vm5 = vmor %vm337_vm3, %vm338_vm4  ;;  %s134_s17 = sand.u32 1, %s5043_s10  }
  0x22   : > { %3110 = vmatpush1.bf16.msra.mxu1 %v4522_v15  ;;  %3038 = vmatprep.subr.bf16.mxu0 %v4523_v16  ;;  %v4563_v42 = vld [vmem:[%s6745_s1 + $0xd0] ss:$8 sps:$4 sm:$0xff]   ;;  %v4565_v44 = vld [vmem:[%s6745_s1 + $0xc4] ss:$8 sps:$4 sm:$0xff]   ;;  %vm174_vm0 = vsmask.f32 3328 }
  0x23   : > { %3111 = vmatprep.subr.bf16.mxu1 %v4525_v17  ;;  %v4564_v43 = vld [vmem:[%s6745_s1 + $0x1d0] ss:$8 sps:$4 sm:$0xff]   ;;  %s5256_s14 = scalar_lea.vmem %s6744_s0, %s4457_s24  ;;  %v4567_v45 = vld [vmem:[%s6745_s1 + $0x1c4] ss:$8 sps:$4 sm:$0xff]   ;;  %vm175_vm1 = vsmask.f32 7440 }
  0x24   : > { %v4569_v46 = vld [vmem:[%s6745_s1 + $0xc0] ss:$8 sps:$4 sm:$0xff]   ;;  %v5274_v49 = vld [vmem:[%s5256_s14 + $0x10] sm:$0xff]  ;;  %v161_v51 = vld [vmem:[%s5256_s14 + $0x18] sm:$0x11]  ;;  %s3945_s21 = sshll.u32 %s134_s17, 6 }
  0x25   : > { %3039 = vmatpush1.bf16.msra.mxu0 %v4527_v18  ;;  %v4570_v47 = vld [vmem:[%s6745_s1 + $0x1c0] ss:$8 sps:$4 sm:$0xff]   ;;  %v4571_v53 = vld [vmem:[%s6745_s1 + $0xb4] ss:$8 sps:$4 sm:$0xff]   ;;  %v192_v59 = vshrl.u32 %v5274_v49, 16  ;;  %v195_v60 = vshll.u32 %v5274_v49, 16  ;;  %vm5304_vm2 = vmor %vm174_vm0, %vm175_vm1 }
  0x26   : > { %3112 = vmatpush1.bf16.msra.mxu1 %v4528_v19  ;;  %3040 = vmatprep.subr.bf16.mxu0 %v4529_v20  ;;  %v5271_v48 = vld [vmem:[%s5256_s14] sm:$0xff]  ;;  %v159_v50 = vld [vmem:[%s5256_s14 + $0x8] sm:$0x11]  ;;  %v4573_v57 = vld [vmem:[%s6745_s1 + $0x1b4] ss:$8 sps:$4 sm:$0xff]   ;;  %v201_v61 = vshll.u32 %v161_v51, 16 }
  0x27   : > { %3113 = vmatprep.subr.bf16.mxu1 %v4531_v21  ;;  %v178_v52 = vshrl.u32 %v5271_v48, 16  ;;  %v4052_v54 = vcombine.high %v5271_v48, %v5274_v49  ;;  %v181_v55 = vshll.u32 %v5271_v48, 16  ;;  %v187_v56 = vshll.u32 %v159_v50, 16  ;;  %v4575_v62 = vld [vmem:[%s6745_s1 + $0xb0] ss:$8 sps:$4 sm:$0xff]   ;;  %s136_s22 = scalar_lea.vmem [#allocation3], %s3945_s21 }
  0x28   : > { %v4576_v0 = vld [vmem:[%s6745_s1 + $0x1b0] ss:$8 sps:$4 sm:$0xff]   ;;  %v194_v1 = vrot.slane %v192_v59, 4  ;;  %v197_v2 = vrot.slane %v195_v60, 5  ;;  %v4577_v3 = vld [vmem:[%s6745_s1 + $0xa4] ss:$8 sps:$4 sm:$0xff]  }
  0x29   : > { %3041 = vmatpush1.bf16.msra.mxu0 %v4533_v22  ;;  %v180_v58 = vrot.slane %v178_v52, 4  ;;  %3062 = vmatprep.mubr.bf16.mxu0 %v4052_v54  ;;  %v183_v63 = vrot.slane %v181_v55, 5  ;;  %v4579_v4 = vld [vmem:[%s6745_s1 + $0x1a4] ss:$8 sps:$4 sm:$0xff]   ;;  %v189_v6 = vrot.slane %v187_v56, 5  ;;  %v203_v9 = vrot.slane %v201_v61, 5 }
  0x2a   : > { %3114 = vmatpush1.bf16.msra.mxu1 %v4534_v23  ;;  %3042 = vmatprep.subr.bf16.mxu0 %v4535_v24  ;;  %v198_v8 = vor.u32 %v197_v2, %v194_v1  ;;  %v4581_v11 = vld [vmem:[%s6745_s1 + $0xa0] ss:$8 sps:$4 sm:$0xff]   ;;  %v4583_v14 = vld [vmem:[%s6745_s1 + $0x94] ss:$8 sps:$4 sm:$0xff]   ;;  %v4587_v19 = vld [vmem:[%s6745_s1 + $0x90] ss:$8 sps:$4 sm:$0xff]  }
  0x2b   : > { %3115 = vmatprep.subr.bf16.mxu1 %v4537_v25  ;;  %v184_v5 = vor.u32 %v183_v63, %v180_v58  ;;  %v4582_v12 = vld [vmem:[%s6745_s1 + $0x1a0] ss:$8 sps:$4 sm:$0xff]   ;;  %v4585_v16 = vld [vmem:[%s6745_s1 + $0x194] ss:$8 sps:$4 sm:$0xff]   ;;  %v4588_v20 = vld [vmem:[%s6745_s1 + $0x190] ss:$8 sps:$4 sm:$0xff]  }
  0x2c   : > { %v199_v13 = vrot.slane %v198_v8, 4  ;;  %v4589_v21 = vld [vmem:[%s6745_s1 + $0x84] ss:$8 sps:$4 sm:$0xff]   ;;  %v4593_v23 = vld [vmem:[%s6745_s1 + $0x80] ss:$8 sps:$4 sm:$0xff]   ;;  %s4424_s23 = sshll.u32 %s5092_s13, 10 }
  0x2d   : > { %3043 = vmatpush1.bf16.msra.mxu0 %v4539_v26  ;;  %v185_v10 = vrot.slane %v184_v5, 4  ;;  %v4591_v22 = vld [vmem:[%s6745_s1 + $0x184] ss:$8 sps:$4 sm:$0xff]   ;;  %v4594_v24 = vld [vmem:[%s6745_s1 + $0x180] ss:$8 sps:$4 sm:$0xff]   ;;  %v5420_v5 = vld [vmem:[%s5256_s14 + $0x50] sm:$0xff]  ;;  %s6697_s27 = scalar_lea.hbm %s6746_s2, %s4424_s23 }
  0x2e   : > { %3116 = vmatpush1.bf16.msra.mxu1 %v4540_v27  ;;  %3044 = vmatprep.subr.bf16.mxu0 %v4541_v28  ;;  %v204_v17 = vsel %vm5304_vm2, %v199_v13, %v203_v9  ;;  %v4599_v25 = vld [vmem:[%s6745_s1 + $0x274] ss:$8 sps:$4 sm:$0xff]   ;;  %v4051_v27 = vcombine.low %v5271_v48, %v5274_v49  ;;  %v4612_v51 = vld [vmem:[%s6745_s1 + $0x350] ss:$8 sps:$4 sm:$0xff]   ;;  %v4617_v52 = vld [vmem:[%s6745_s1 + $0x244] ss:$8 sps:$4 sm:$0xff]  }
  0x2f   : > { %3117 = vmatprep.subr.bf16.mxu1 %v4543_v29  ;;  %v190_v15 = vsel %vm5304_vm2, %v185_v10, %v189_v6  ;;  %v4602_v26 = vld [vmem:[%s6745_s1 + $0x374] ss:$8 sps:$4 sm:$0xff]   ;;  %v4597_v29 = vld [vmem:[%s6745_s1 + $0x270] ss:$8 sps:$4 sm:$0xff]   ;;  %v4620_v55 = vld [vmem:[%s6745_s1 + $0x344] ss:$8 sps:$4 sm:$0xff]  }
  0x30   : > { %v4054_v18 = vcombine.high %v190_v15, %v204_v17  ;;  %v4053_v28 = vcombine.low %v190_v15, %v204_v17  ;;  %v4615_v60 = vld [vmem:[%s6745_s1 + $0x240] ss:$8 sps:$4 sm:$0xff]   ;;  %v4626_v2 = vld [vmem:[%s6745_s1 + $0x334] ss:$8 sps:$4 sm:$0xff]   ;;  %v4621_v6 = vld [vmem:[%s6745_s1 + $0x230] ss:$8 sps:$4 sm:$0xff]  }
  0x31   : > { %3045 = vmatpush1.bf16.msra.mxu0 %v4545_v30  ;;  %v4600_v30 = vld [vmem:[%s6745_s1 + $0x370] ss:$8 sps:$4 sm:$0xff]   ;;  %v4618_v61 = vld [vmem:[%s6745_s1 + $0x340] ss:$8 sps:$4 sm:$0xff]   ;;  %v248_v17 = vshrl.u32 %v5420_v5, 16  ;;  %s3879_s24 = sshll.u32 %s136_s22, 4  ;;  %s6699_s24 = int_to_ptr.vmem [resolvable:$true] %s3879_s24 }
  0x32   : > { %3118 = vmatpush1.bf16.msra.mxu1 %v4546_v31  ;;  %3046 = vmatprep.subr.bf16.mxu0 %v4547_v32  ;;  %v4605_v31 = vld [vmem:[%s6745_s1 + $0x264] ss:$8 sps:$4 sm:$0xff]   ;;  %v4624_v8 = vld [vmem:[%s6745_s1 + $0x330] ss:$8 sps:$4 sm:$0xff]   ;;  %s6704_s13 = scalar_lea.sflag [#allocation4], %s134_s17  ;;  %s4991_s28 = scalar_lea.vmem %s6699_s24, 1024 }
  0x33   : > { %3119 = vmatprep.subr.bf16.mxu1 %v4549_v33  ;;  %3135 = vmatprep.mubr.bf16.mxu1 %v4054_v18  ;;  %v4608_v32 = vld [vmem:[%s6745_s1 + $0x364] ss:$8 sps:$4 sm:$0xff]   ;;  %v4603_v33 = vld [vmem:[%s6745_s1 + $0x260] ss:$8 sps:$4 sm:$0xff]   ;;  %v251_v18 = vshll.u32 %v5420_v5, 16  ;;  %p4992_p11 = scmp.ne.s32.totalorder %s6699_s24, %s4991_s28  ;;  %s5053_s29 = smov [#allocation3]  }
  0x34   : > { %v4922_v7 = vld [vmem:[%s6745_s1 + $0x824] ss:$8 sps:$4 sm:$0xff]   ;;  %s4995_s30 = sshll.u32 %s5053_s29, 4  ;;  %s4996_s30 = int_to_ptr.vmem [resolvable:$false] %s4995_s30 }
  0x35   : > { %3047 = vmatpush2.bf16.msra.mxu0 %v4551_v34  ;;  %v4606_v34 = vld [vmem:[%s6745_s1 + $0x360] ss:$8 sps:$4 sm:$0xff]   ;;  %p4993_p12 = pnand %p4992_p11, %p5109_p5  ;;  %s4997_s3 = scalar_lea.vmem %s4996_s30, 2048 }
  0x36   : > { %3120 = vmatpush2.bf16.msra.mxu1 %v4552_v35  ;;  %3048 = vmatprep.subr.bf16.mxu0 %v4553_v36  ;;  %v4611_v35 = vld [vmem:[%s6745_s1 + $0x254] ss:$8 sps:$4 sm:$0xff]   ;;  %p4998_p0 = scmp.lt.s32.totalorder %s6699_s24, %s4996_s30  ;;  %p4999_p1 = scmp.lt.s32.totalorder %s4997_s3, %s4991_s28 }
  0x37   : > { %3121 = vmatprep.subr.bf16.mxu1 %v4555_v37  ;;  %v4614_v36 = vld [vmem:[%s6745_s1 + $0x354] ss:$8 sps:$4 sm:$0xff]   ;;  %v5375_v37 = vld [vmem:[%s5256_s14 + $0x20] sm:$0xff]  ;;  %p4994_p13 = pneg %p4993_p12 }
  0x38   : > { %p5000_p2 = por %p4999_p1, %p4998_p0 }
  0x39   : > { %3049 = vmatpush2.bf16.msra.mxu0 %v4557_v38  ;;  %v5378_v38 = vld [vmem:[%s5256_s14 + $0x30] sm:$0xff] }
  0x3a   : > { %3122 = vmatpush2.bf16.msra.mxu1 %v4558_v39  ;;  %3050 = vmatprep.subr.bf16.mxu0 %v4559_v40  ;;  %v4609_v39 = vld [vmem:[%s6745_s1 + $0x250] ss:$8 sps:$4 sm:$0xff]   ;;  %v4070_v40 = vcombine.high %v5375_v37, %v5378_v38  ;;  %v223_v48 = vshll.u32 %v5378_v38, 16  ;;  %p5001_p3 = pnand %p5000_p2, %p4994_p13 }
  0x3b   : > { %3123 = vmatprep.subr.bf16.mxu1 %v4561_v41  ;;  %v163_v41 = vld [vmem:[%s5256_s14 + $0x28] sm:$0x11] }
  0x3d   : > { %3051 = vmatpush2.bf16.msra.mxu0 %v4563_v42  ;;  %v165_v42 = vld [vmem:[%s5256_s14 + $0x38] sm:$0x11] }
  0x3e   : > { %3124 = vmatpush2.bf16.msra.mxu1 %v4564_v43  ;;  %3052 = vmatprep.subr.bf16.mxu0 %v4565_v44  ;;  %v206_v43 = vshrl.u32 %v5375_v37, 16  ;;  %v209_v44 = vshll.u32 %v5375_v37, 16  ;;  %v229_v50 = vshll.u32 %v165_v42, 16  ;;  %v5467_v42 = vld [vmem:[%s5256_s14 + $0x70] sm:$0xff] }
  0x3f   : > { %3125 = vmatprep.subr.bf16.mxu1 %v4567_v45  ;;  %v4069_v45 = vcombine.low %v5375_v37, %v5378_v38 }
  0x40   : > { %v211_v54 = vrot.slane %v209_v44, 5  ;;  %v231_v63 = vrot.slane %v229_v50, 5  ;;  %v4633_v44 = vld [vmem:[%s6745_s1 + $0x210] ss:$8 sps:$4 sm:$0xff]  }
  0x41   : > { %3053 = vmatpush2.bf16.msra.mxu0 %v4569_v46  ;;  %v215_v46 = vshll.u32 %v163_v41, 16  ;;  %v5464_v41 = vld [vmem:[%s5256_s14 + $0x60] sm:$0xff] }
  0x42   : > { %3126 = vmatpush2.bf16.msra.mxu1 %v4570_v47  ;;  %3054 = vmatprep.subr.bf16.mxu0 %v4571_v53  ;;  %v220_v47 = vshrl.u32 %v5378_v38, 16  ;;  %v208_v53 = vrot.slane %v206_v43, 4  ;;  %v171_v43 = vld [vmem:[%s5256_s14 + $0x68] sm:$0x11]  ;;  %v265_v50 = vshll.u32 %v5464_v41, 16 }
  0x43   : > { %3127 = vmatprep.subr.bf16.mxu1 %v4573_v57  ;;  %v225_v57 = vrot.slane %v223_v48, 5  ;;  %v217_v59 = vrot.slane %v215_v46, 5  ;;  %v4106_v46 = vcombine.high %v5464_v41, %v5467_v42  ;;  %v262_v48 = vshrl.u32 %v5464_v41, 16 }
  0x44   : > { %v222_v56 = vrot.slane %v220_v47, 4  ;;  %v212_v58 = vor.u32 %v211_v54, %v208_v53  ;;  %v173_v47 = vld [vmem:[%s5256_s14 + $0x78] sm:$0x11]  ;;  %v271_v53 = vshll.u32 %v171_v43, 16  ;;  %v276_v54 = vshrl.u32 %v5467_v42, 16 }
  0x45   : > { %3055 = vmatpush2.bf16.msra.mxu0 %v4575_v62  ;;  %v4661_v43 = vld [vmem:[%s6745_s1 + $0x2d4] ss:$8 sps:$4 sm:$0xff]  }
  0x46   : > { %3128 = vmatpush2.bf16.msra.mxu1 %v4576_v0  ;;  %3056 = vmatprep.subr.bf16.mxu0 %v4577_v3  ;;  %v226_v62 = vor.u32 %v225_v57, %v222_v56  ;;  %v4623_v0 = vld [vmem:[%s6745_s1 + $0x234] ss:$8 sps:$4 sm:$0xff]   ;;  %v5411_v1 = vrot.slane %v212_v58, 4  ;;  %v4641_v56 = vld [vmem:[%s6745_s1 + $0x204] ss:$8 sps:$4 sm:$0xff]  }
  0x47   : > { %3129 = vmatprep.subr.bf16.mxu1 %v4579_v4  ;;  %v5417_v4 = vld [vmem:[%s5256_s14 + $0x40] sm:$0xff] }
  0x48   : > { %v227_v3 = vrot.slane %v226_v62, 4  ;;  %v218_v9 = vsel %vm5304_vm2, %v5411_v1, %v217_v59  ;;  %v4088_v10 = vcombine.high %v5417_v4, %v5420_v5  ;;  %v234_v13 = vshrl.u32 %v5417_v4, 16 }
  0x49   : > { %3057 = vmatpush2.bf16.msra.mxu0 %v4581_v11  ;;  %v167_v11 = vld [vmem:[%s5256_s14 + $0x48] sm:$0x11]  ;;  %v264_v59 = vrot.slane %v262_v48, 4  ;;  %v278_v62 = vrot.slane %v276_v54, 4  ;;  %v4678_v54 = vld [vmem:[%s6745_s1 + $0x3b4] ss:$8 sps:$4 sm:$0xff]  }
  0x4a   : > { %3130 = vmatpush2.bf16.msra.mxu1 %v4582_v12  ;;  %3058 = vmatprep.subr.bf16.mxu0 %v4583_v14  ;;  %v169_v12 = vld [vmem:[%s5256_s14 + $0x58] sm:$0x11]  ;;  %v237_v14 = vshll.u32 %v5417_v4, 16  ;;  %v232_v15 = vsel %vm5304_vm2, %v227_v3, %v231_v63  ;;  %v273_v3 = vrot.slane %v271_v53, 5  ;;  %v4669_v48 = vld [vmem:[%s6745_s1 + $0x2c4] ss:$8 sps:$4 sm:$0xff]  }
  0x4b   : > { %3131 = vmatprep.subr.bf16.mxu1 %v4585_v16  ;;  %v243_v16 = vshll.u32 %v167_v11, 16  ;;  %v4639_v11 = vld [vmem:[%s6745_s1 + $0x200] ss:$8 sps:$4 sm:$0xff]   ;;  %v4675_v53 = vld [vmem:[%s6745_s1 + $0x2b4] ss:$8 sps:$4 sm:$0xff]  }
  0x4d   : > { %3059 = vmatpush2.bf16.msra.mxu0 %v4587_v19  ;;  %v4629_v19 = vld [vmem:[%s6745_s1 + $0x224] ss:$8 sps:$4 sm:$0xff]  }
  0x4e   : > { %3132 = vmatpush2.bf16.msra.mxu1 %v4588_v20  ;;  %3060 = vmatprep.subr.bf16.mxu0 %v4589_v21  ;;  %v4632_v20 = vld [vmem:[%s6745_s1 + $0x324] ss:$8 sps:$4 sm:$0xff]   ;;  %v4072_v21 = vcombine.high %v218_v9, %v232_v15 }
  0x4f   : > { %3133 = vmatprep.subr.bf16.mxu1 %v4591_v22  ;;  %v4071_v22 = vcombine.low %v218_v9, %v232_v15  ;;  %v4650_v15 = vld [vmem:[%s6745_s1 + $0x3f4] ss:$8 sps:$4 sm:$0xff]  }
  0x51   : > { %3061 = vmatpush2.bf16.msra.mxu0 %v4593_v23  ;;  %v236_v23 = vrot.slane %v234_v13, 4 }
  0x52   : > { %3134 = vmatpush2.bf16.msra.mxu1 %v4594_v24  ;;  %3176 = vmatprep.subr.bf16.mxu0 %v4599_v25  ;;  %v239_v24 = vrot.slane %v237_v14, 5  ;;  %v250_v25 = vrot.slane %v248_v17, 4  ;;  %v4647_v14 = vld [vmem:[%s6745_s1 + $0x2f4] ss:$8 sps:$4 sm:$0xff]   ;;  %v4645_v17 = vld [vmem:[%s6745_s1 + $0x2f0] ss:$8 sps:$4 sm:$0xff]  }
  0x53   : > { %3249 = vmatprep.subr.bf16.mxu1 %v4602_v26  ;;  %v253_v26 = vrot.slane %v251_v18, 5  ;;  %v4648_v18 = vld [vmem:[%s6745_s1 + $0x3f0] ss:$8 sps:$4 sm:$0xff]  }
  0x54   : > { %3063 = vmatmul.mubr.bf16.vlgmr.msra.gmra.mxu0 %v4051_v27  ;;  %v257_v27 = vshll.u32 %v169_v12, 16  ;;  %v4642_v12 = vld [vmem:[%s6745_s1 + $0x300] ss:$8 sps:$4 sm:$0xff]  }
  0x55   : > { %3136 = vmatmul.mubr.bf16.vlgmr.msra.gmra.mxu1 %v4053_v28  ;;  %3177 = vmatpush1.bf16.msra.mxu0 %v4597_v29  ;;  %v240_v28 = vor.u32 %v239_v24, %v236_v23  ;;  %v245_v29 = vrot.slane %v243_v16, 5  ;;  %v306_v23 = vld [vmem:[%s5256_s14 + $0x8] sm:$0x11] }
  0x56   : > { %3250 = vmatpush1.bf16.msra.mxu1 %v4600_v30  ;;  %3178 = vmatprep.subr.bf16.mxu0 %v4605_v31  ;;  %v4087_v30 = vcombine.low %v5417_v4, %v5420_v5  ;;  %v4627_v31 = vld [vmem:[%s6745_s1 + $0x220] ss:$8 sps:$4 sm:$0xff]  }
  0x57   : > { %3251 = vmatprep.subr.bf16.mxu1 %v4608_v32  ;;  %3072 = vmatprep.mubr.bf16.mxu0 %v4070_v40  ;;  %v4630_v32 = vld [vmem:[%s6745_s1 + $0x320] ss:$8 sps:$4 sm:$0xff]  }
  0x58   : > { %3145 = vmatprep.mubr.bf16.mxu1 %v4072_v21 }
  0x59   : > { %3179 = vmatpush1.bf16.msra.mxu0 %v4603_v33  ;;  %v254_v33 = vor.u32 %v253_v26, %v250_v25  ;;  %v307_v26 = vld [vmem:[%s5256_s14 + $0x10] sm:$0xee] }
  0x5a   : > { %3252 = vmatpush1.bf16.msra.mxu1 %v4606_v34  ;;  %3180 = vmatprep.subr.bf16.mxu0 %v4611_v35  ;;  %v259_v34 = vrot.slane %v257_v27, 5  ;;  %v4635_v35 = vld [vmem:[%s6745_s1 + $0x214] ss:$8 sps:$4 sm:$0xff]  }
  0x5b   : > { %3253 = vmatprep.subr.bf16.mxu1 %v4614_v36  ;;  %v4638_v36 = vld [vmem:[%s6745_s1 + $0x314] ss:$8 sps:$4 sm:$0xff]   ;;  %v255_v40 = vrot.slane %v254_v33, 4 }
  0x5c   : > { %3073 = vmatmul.mubr.bf16.gmra.mxu0 %v4069_v45  ;;  %v308_v27 = vld [vmem:[%s5256_s14 + $0x18] sm:$0x11] }
  0x5d   : > { %3181 = vmatpush1.bf16.msra.mxu0 %v4609_v39  ;;  %3082 = vmatprep.mubr.bf16.mxu0 %v4088_v10  ;;  %v5461_v39 = vrot.slane %v240_v28, 4 }
  0x5e   : > { %3254 = vmatpush1.bf16.msra.mxu1 %v4612_v51  ;;  %3182 = vmatprep.subr.bf16.mxu0 %v4617_v52  ;;  %v4636_v51 = vld [vmem:[%s6745_s1 + $0x310] ss:$8 sps:$4 sm:$0xff]   ;;  %v260_v52 = vsel %vm5304_vm2, %v255_v40, %v259_v34  ;;  %v4058_v34 = vcombine.high %v5274_v49, %v5375_v37  ;;  %v4656_v40 = vld [vmem:[%s6745_s1 + $0x3e0] ss:$8 sps:$4 sm:$0xff]  }
  0x5f   : > { %3255 = vmatprep.subr.bf16.mxu1 %v4620_v55  ;;  %3146 = vmatmul.mubr.bf16.gmra.mxu1 %v4071_v22  ;;  %v246_v45 = vsel %vm5304_vm2, %v5461_v39, %v245_v29  ;;  %v279_v55 = vshll.u32 %v5467_v42, 16  ;;  %v305_v22 = vld [vmem:[%s5256_s14] sm:$0xee]  ;;  %v342_v29 = vrot.slane %v306_v23, 5 }
  0x60   : > { %v4090_v57 = vcombine.high %v246_v45, %v260_v52  ;;  %v4089_v58 = vcombine.low %v246_v45, %v260_v52  ;;  %v3947_v28 = vrot.slane %v305_v22, 9  ;;  %v4664_v45 = vld [vmem:[%s6745_s1 + $0x3d4] ss:$8 sps:$4 sm:$0xff]   ;;  %v4670_v52 = vld [vmem:[%s6745_s1 + $0x3c0] ss:$8 sps:$4 sm:$0xff]  }
  0x61   : > { %3183 = vmatpush1.bf16.msra.mxu0 %v4615_v60  ;;  %v267_v60 = vrot.slane %v265_v50, 5  ;;  %v281_v63 = vrot.slane %v279_v55, 5  ;;  %v4672_v50 = vld [vmem:[%s6745_s1 + $0x3c4] ss:$8 sps:$4 sm:$0xff]   ;;  %v4673_v55 = vld [vmem:[%s6745_s1 + $0x2b0] ss:$8 sps:$4 sm:$0xff]  }
  0x62   : > { %3256 = vmatpush1.bf16.msra.mxu1 %v4618_v61  ;;  %3184 = vmatprep.subr.bf16.mxu0 %v4623_v0  ;;  %v4644_v61 = vld [vmem:[%s6745_s1 + $0x304] ss:$8 sps:$4 sm:$0xff]   ;;  %v285_v0 = vshll.u32 %v173_v47, 16  ;;  %v5539_v33 = vsel %vm5498_vm5, %v3947_v28, %v342_v29  ;;  %v4662_v47 = vld [vmem:[%s6745_s1 + $0x3d0] ss:$8 sps:$4 sm:$0xff]  }
  0x63   : > { %3257 = vmatprep.subr.bf16.mxu1 %v4626_v2  ;;  %3155 = vmatprep.mubr.bf16.mxu1 %v4090_v57  ;;  %v268_v2 = vor.u32 %v267_v60, %v264_v59  ;;  %v4683_v57 = vld [vmem:[%s6745_s1 + $0x2a4] ss:$8 sps:$4 sm:$0xff]   ;;  %v4681_v59 = vld [vmem:[%s6745_s1 + $0x2a0] ss:$8 sps:$4 sm:$0xff]   ;;  %v4701_v22 = vld [vmem:[%s6745_s1 + $0x470] ss:$8 sps:$4 sm:$0xff]  }
  0x64   : > { %3083 = vmatmul.mubr.bf16.gmra.mxu0 %v4087_v30  ;;  %v287_v9 = vrot.slane %v285_v0, 5  ;;  %v4658_v30 = vld [vmem:[%s6745_s1 + $0x3e4] ss:$8 sps:$4 sm:$0xff]   ;;  %v4684_v60 = vld [vmem:[%s6745_s1 + $0x3a0] ss:$8 sps:$4 sm:$0xff]  }
  0x65   : > { %3185 = vmatpush1.bf16.msra.mxu0 %v4621_v6  ;;  %3092 = vmatprep.mubr.bf16.mxu0 %v4106_v46  ;;  %v4105_v6 = vcombine.low %v5464_v41, %v5467_v42  ;;  %v5508_v13 = vrot.slane %v268_v2, 4  ;;  %v4659_v46 = vld [vmem:[%s6745_s1 + $0x2d0] ss:$8 sps:$4 sm:$0xff]   ;;  %v310_v0 = vld [vmem:[%s5256_s14 + $0x28] sm:$0x11] }
  0x66   : > { %3258 = vmatpush1.bf16.msra.mxu1 %v4624_v8  ;;  %3186 = vmatprep.subr.bf16.mxu0 %v4629_v19  ;;  %v282_v8 = vor.u32 %v281_v63, %v278_v62  ;;  %v4692_v62 = vld [vmem:[%s6745_s1 + $0x394] ss:$8 sps:$4 sm:$0xff]   ;;  %v309_v63 = vld [vmem:[%s5256_s14 + $0x20] sm:$0xee] }
  0x67   : > { %3259 = vmatprep.subr.bf16.mxu1 %v4632_v20  ;;  %3156 = vmatmul.mubr.bf16.gmra.mxu1 %v4089_v58  ;;  %v274_v19 = vsel %vm5304_vm2, %v5508_v13, %v273_v3  ;;  %v4655_v20 = vld [vmem:[%s6745_s1 + $0x2e4] ss:$8 sps:$4 sm:$0xff]   ;;  %v311_v2 = vld [vmem:[%s5256_s14 + $0x30] sm:$0xee]  ;;  %v312_v3 = vld [vmem:[%s5256_s14 + $0x38] sm:$0x11] }
  0x68   : > { %v283_v16 = vrot.slane %v282_v8, 4  ;;  %v4686_v58 = vld [vmem:[%s6745_s1 + $0x3a4] ss:$8 sps:$4 sm:$0xff]   ;;  %v4690_v8 = vld [vmem:[%s6745_s1 + $0x390] ss:$8 sps:$4 sm:$0xff]  }
  0x69   : > { %3187 = vmatpush1.bf16.msra.mxu0 %v4627_v31  ;;  %v3948_v31 = vrot.slane %v307_v26, 9  ;;  %v315_v28 = vld [vmem:[%s5256_s14 + $0x50] sm:$0xee]  ;;  %v316_v29 = vld [vmem:[%s5256_s14 + $0x58] sm:$0x11] }
  0x6a   : > { %3260 = vmatpush1.bf16.msra.mxu1 %v4630_v32  ;;  %3188 = vmatprep.subr.bf16.mxu0 %v4635_v35  ;;  %v288_v21 = vsel %vm5304_vm2, %v283_v16, %v287_v9  ;;  %v346_v32 = vrot.slane %v308_v27, 5  ;;  %v4653_v35 = vld [vmem:[%s6745_s1 + $0x2e0] ss:$8 sps:$4 sm:$0xff]   ;;  %v4695_v9 = vld [vmem:[%s6745_s1 + $0x284] ss:$8 sps:$4 sm:$0xff]   ;;  %v354_v16 = vrot.slane %v312_v3, 5  ;;  %v4057_v27 = vcombine.low %v5274_v49, %v5375_v37 }
  0x6b   : > { %3261 = vmatprep.subr.bf16.mxu1 %v4638_v36  ;;  %v4108_v24 = vcombine.high %v274_v19, %v288_v21  ;;  %v4107_v25 = vcombine.low %v274_v19, %v288_v21  ;;  %v4703_v19 = vld [vmem:[%s6745_s1 + $0x474] ss:$8 sps:$4 sm:$0xff]   ;;  %v313_v21 = vld [vmem:[%s5256_s14 + $0x40] sm:$0xee]  ;;  %v4076_v49 = vcombine.high %v5378_v38, %v5417_v4 }
  0x6c   : > { %3093 = vmatmul.mubr.bf16.gmra.mxu0 %v4105_v6  ;;  %v5548_v36 = vsel %vm5498_vm5, %v3948_v31, %v346_v32  ;;  %v4687_v6 = vld [vmem:[%s6745_s1 + $0x290] ss:$8 sps:$4 sm:$0xff]   ;;  %v4709_v31 = vld [vmem:[%s6745_s1 + $0x464] ss:$8 sps:$4 sm:$0xff]   ;;  %v3951_v37 = vrot.slane %v313_v21, 9 }
  0x6d   : > { %3189 = vmatpush1.bf16.msra.mxu0 %v4633_v44  ;;  %3165 = vmatprep.mubr.bf16.mxu1 %v4108_v24  ;;  %v4056_v44 = vcombine.high %v5539_v33, %v5548_v36  ;;  %v4055_v26 = vcombine.low %v5539_v33, %v5548_v36  ;;  %v4712_v32 = vld [vmem:[%s6745_s1 + $0x564] ss:$8 sps:$4 sm:$0xff]   ;;  %v362_v36 = vrot.slane %v316_v29, 5  ;;  %v4732_v3 = vld [vmem:[%s6745_s1 + $0x534] ss:$8 sps:$4 sm:$0xff]  }
  0x6e   : > { %3262 = vmatpush1.bf16.msra.mxu1 %v4636_v51  ;;  %3190 = vmatprep.subr.bf16.mxu0 %v4641_v56  ;;  %v4667_v51 = vld [vmem:[%s6745_s1 + $0x2c0] ss:$8 sps:$4 sm:$0xff]   ;;  %v4676_v56 = vld [vmem:[%s6745_s1 + $0x3b0] ss:$8 sps:$4 sm:$0xff]  }
  0x6f   : > { %3263 = vmatprep.subr.bf16.mxu1 %v4644_v61  ;;  %3166 = vmatmul.mubr.bf16.gmra.mxu1 %v4107_v25  ;;  %v4689_v61 = vld [vmem:[%s6745_s1 + $0x294] ss:$8 sps:$4 sm:$0xff]   ;;  %v314_v25 = vld [vmem:[%s5256_s14 + $0x48] sm:$0x11] }
  0x70   : > { %3208 = vmatprep.mubr.bf16.mxu0 %v4056_v44  ;;  %3281 = vmatprep.mubr.bf16.mxu1 %v4058_v34  ;;  %v358_v34 = vrot.slane %v314_v25, 5  ;;  %v4715_v44 = vld [vmem:[%s6745_s1 + $0x454] ss:$8 sps:$4 sm:$0xff]   ;;  %v4735_v21 = vld [vmem:[%s6745_s1 + $0x420] ss:$8 sps:$4 sm:$0xff]  }
  0x71   : > { %3191 = vmatpush1.bf16.msra.mxu0 %v4639_v11  ;;  %v4698_v11 = vld [vmem:[%s6745_s1 + $0x384] ss:$8 sps:$4 sm:$0xff]   ;;  %v3980_v29 = vld [vmem:[%s5256_s14 + $0x18] sm:$0x11] }
  0x72   : > { %3264 = vmatpush1.bf16.msra.mxu1 %v4642_v12  ;;  %3192 = vmatprep.subr.bf16.mxu0 %v4647_v14  ;;  %v3949_v12 = vrot.slane %v309_v63, 9  ;;  %v350_v14 = vrot.slane %v310_v0, 5  ;;  %v4721_v63 = vld [vmem:[%s6745_s1 + $0x440] ss:$8 sps:$4 sm:$0xff]  }
  0x73   : > { %3265 = vmatprep.subr.bf16.mxu1 %v4650_v15  ;;  %v3950_v15 = vrot.slane %v311_v2, 9  ;;  %v4724_v0 = vld [vmem:[%s6745_s1 + $0x540] ss:$8 sps:$4 sm:$0xff]   ;;  %v4729_v2 = vld [vmem:[%s6745_s1 + $0x434] ss:$8 sps:$4 sm:$0xff]  }
  0x74   : > { %v351_v23 = vsel %vm5498_vm5, %v3949_v12, %v350_v14  ;;  %v4727_v12 = vld [vmem:[%s6745_s1 + $0x430] ss:$8 sps:$4 sm:$0xff]  }
  0x75   : > { %3193 = vmatpush2.bf16.msra.mxu0 %v4645_v17  ;;  %v4693_v17 = vld [vmem:[%s6745_s1 + $0x280] ss:$8 sps:$4 sm:$0xff]   ;;  %v355_v24 = vsel %vm5498_vm5, %v3950_v15, %v354_v16  ;;  %v4730_v14 = vld [vmem:[%s6745_s1 + $0x530] ss:$8 sps:$4 sm:$0xff]   ;;  %v4093_v15 = vcombine.low %v5420_v5, %v5464_v41  ;;  %v4737_v16 = vld [vmem:[%s6745_s1 + $0x424] ss:$8 sps:$4 sm:$0xff]  }
  0x76   : > { %3266 = vmatpush2.bf16.msra.mxu1 %v4648_v18  ;;  %3194 = vmatprep.subr.bf16.mxu0 %v4655_v20  ;;  %v4696_v18 = vld [vmem:[%s6745_s1 + $0x380] ss:$8 sps:$4 sm:$0xff]   ;;  %v4706_v20 = vld [vmem:[%s6745_s1 + $0x574] ss:$8 sps:$4 sm:$0xff]   ;;  %v4074_v33 = vcombine.high %v351_v23, %v355_v24 }
  0x77   : > { %3267 = vmatprep.subr.bf16.mxu1 %v4658_v30  ;;  %v4704_v30 = vld [vmem:[%s6745_s1 + $0x570] ss:$8 sps:$4 sm:$0xff]  }
  0x79   : > { %3195 = vmatpush2.bf16.msra.mxu0 %v4653_v35  ;;  %v3952_v35 = vrot.slane %v315_v28, 9  ;;  %v4743_v28 = vld [vmem:[%s6745_s1 + $0x414] ss:$8 sps:$4 sm:$0xff]  }
  0x7a   : > { %3268 = vmatpush2.bf16.msra.mxu1 %v4656_v40  ;;  %3196 = vmatprep.subr.bf16.mxu0 %v4661_v43  ;;  %v4707_v40 = vld [vmem:[%s6745_s1 + $0x460] ss:$8 sps:$4 sm:$0xff]  }
  0x7b   : > { %3269 = vmatprep.subr.bf16.mxu1 %v4664_v45  ;;  %v4710_v43 = vld [vmem:[%s6745_s1 + $0x560] ss:$8 sps:$4 sm:$0xff]   ;;  %v4718_v45 = vld [vmem:[%s6745_s1 + $0x554] ss:$8 sps:$4 sm:$0xff]  }
  0x7d   : > { %3197 = vmatpush2.bf16.msra.mxu0 %v4659_v46  ;;  %v317_v46 = vld [vmem:[%s5256_s14 + $0x60] sm:$0xee] }
  0x7e   : > { %3270 = vmatpush2.bf16.msra.mxu1 %v4662_v47  ;;  %3198 = vmatprep.subr.bf16.mxu0 %v4669_v48  ;;  %v4713_v47 = vld [vmem:[%s6745_s1 + $0x450] ss:$8 sps:$4 sm:$0xff]   ;;  %v359_v48 = vsel %vm5498_vm5, %v3951_v37, %v358_v34  ;;  %v4746_v37 = vld [vmem:[%s6745_s1 + $0x514] ss:$8 sps:$4 sm:$0xff]  }
  0x7f   : > { %3271 = vmatprep.subr.bf16.mxu1 %v4672_v50  ;;  %v363_v50 = vsel %vm5498_vm5, %v3952_v35, %v362_v36  ;;  %v583_v35 = vrot.slane %v3980_v29, 5  ;;  %v5878_v29 = vld [vmem:[%s5256_s14 + $0x50] sm:$0xff] }
  0x81   : > { %3199 = vmatpush2.bf16.msra.mxu0 %v4667_v51  ;;  %v318_v51 = vld [vmem:[%s5256_s14 + $0x68] sm:$0x11] }
  0x82   : > { %3272 = vmatpush2.bf16.msra.mxu1 %v4670_v52  ;;  %3200 = vmatprep.subr.bf16.mxu0 %v4675_v53  ;;  %v4073_v52 = vcombine.low %v351_v23, %v355_v24  ;;  %v4075_v53 = vcombine.low %v5378_v38, %v5417_v4  ;;  %v4094_v38 = vcombine.high %v5420_v5, %v5464_v41  ;;  %v3953_v4 = vrot.slane %v317_v46, 9  ;;  %v3963_v41 = vld [vmem:[%s5256_s14 + $0x10] sm:$0xff] }
  0x83   : > { %3273 = vmatprep.subr.bf16.mxu1 %v4678_v54  ;;  %v319_v54 = vld [vmem:[%s5256_s14 + $0x70] sm:$0xee]  ;;  %v422_v23 = vshrl.u32 %v3963_v41, 16  ;;  %v425_v24 = vshll.u32 %v3963_v41, 16 }
  0x84   : > { %v4741_v46 = vld [vmem:[%s6745_s1 + $0x410] ss:$8 sps:$4 sm:$0xff]  }
  0x85   : > { %3201 = vmatpush2.bf16.msra.mxu0 %v4673_v55  ;;  %v320_v55 = vld [vmem:[%s5256_s14 + $0x78] sm:$0x11] }
  0x86   : > { %3274 = vmatpush2.bf16.msra.mxu1 %v4676_v56  ;;  %3202 = vmatprep.subr.bf16.mxu0 %v4683_v57  ;;  %v4716_v56 = vld [vmem:[%s6745_s1 + $0x550] ss:$8 sps:$4 sm:$0xff]   ;;  %v4723_v57 = vld [vmem:[%s6745_s1 + $0x444] ss:$8 sps:$4 sm:$0xff]  }
  0x87   : > { %3275 = vmatprep.subr.bf16.mxu1 %v4686_v58  ;;  %v4726_v58 = vld [vmem:[%s6745_s1 + $0x544] ss:$8 sps:$4 sm:$0xff]  }
  0x89   : > { %3203 = vmatpush2.bf16.msra.mxu0 %v4681_v59  ;;  %v4092_v59 = vcombine.high %v359_v48, %v363_v50 }
  0x8a   : > { %3276 = vmatpush2.bf16.msra.mxu1 %v4684_v60  ;;  %3204 = vmatprep.subr.bf16.mxu0 %v4689_v61  ;;  %v366_v60 = vrot.slane %v318_v51, 5  ;;  %v3954_v61 = vrot.slane %v319_v54, 9  ;;  %v4744_v51 = vld [vmem:[%s6745_s1 + $0x510] ss:$8 sps:$4 sm:$0xff]   ;;  %v4754_v54 = vld [vmem:[%s6745_s1 + $0x504] ss:$8 sps:$4 sm:$0xff]  }
  0x8b   : > { %3277 = vmatprep.subr.bf16.mxu1 %v4692_v62  ;;  %v370_v62 = vrot.slane %v320_v55, 5 }
  0x8d   : > { %3205 = vmatpush2.bf16.msra.mxu0 %v4687_v6  ;;  %v5713_v6 = vsel %vm5498_vm5, %v3953_v4, %v366_v60  ;;  %v4755_v4 = vld [vmem:[%s6745_s1 + $0x4f0] ss:$8 sps:$4 sm:$0xff]  }
  0x8e   : > { %3278 = vmatpush2.bf16.msra.mxu1 %v4690_v8  ;;  %3206 = vmatprep.subr.bf16.mxu0 %v4695_v9  ;;  %v371_v8 = vsel %vm5498_vm5, %v3954_v61, %v370_v62  ;;  %v5718_v9 = vld [vmem:[%s5256_s14 + $0x80] sm:$0xff]  ;;  %v4758_v60 = vld [vmem:[%s6745_s1 + $0x5f0] ss:$8 sps:$4 sm:$0xff]  }
  0x8f   : > { %3279 = vmatprep.subr.bf16.mxu1 %v4698_v11  ;;  %v4091_v11 = vcombine.low %v359_v48, %v363_v50  ;;  %v4112_v5 = vcombine.high %v5467_v42, %v5718_v9  ;;  %v4763_v61 = vld [vmem:[%s6745_s1 + $0x4e4] ss:$8 sps:$4 sm:$0xff]  }
  0x90   : > { %v4766_v62 = vld [vmem:[%s6745_s1 + $0x5e4] ss:$8 sps:$4 sm:$0xff]  }
  0x91   : > { %3207 = vmatpush2.bf16.msra.mxu0 %v4693_v17  ;;  %v4740_v17 = vld [vmem:[%s6745_s1 + $0x524] ss:$8 sps:$4 sm:$0xff]  }
  0x92   : > { %3280 = vmatpush2.bf16.msra.mxu1 %v4696_v18  ;;  %3322 = vmatprep.subr.bf16.mxu0 %v4703_v19  ;;  %v4110_v18 = vcombine.high %v5713_v6, %v371_v8  ;;  %v3964_v19 = vld [vmem:[%s5256_s14 + $0x18] sm:$0x11] }
  0x93   : > { %3395 = vmatprep.subr.bf16.mxu1 %v4706_v20  ;;  %v3966_v20 = vld [vmem:[%s5256_s14 + $0x28] sm:$0x11]  ;;  %v431_v25 = vshll.u32 %v3964_v19, 16  ;;  %v4779_v19 = vld [vmem:[%s6745_s1 + $0x4b0] ss:$8 sps:$4 sm:$0xff]  }
  0x94   : > { %3209 = vmatmul.mubr.bf16.vlgmr.msra.gmra.mxu0 %v4055_v26  ;;  %v445_v26 = vshll.u32 %v3966_v20, 16  ;;  %v4782_v20 = vld [vmem:[%s6745_s1 + $0x5b0] ss:$8 sps:$4 sm:$0xff]  }
  0x95   : > { %3282 = vmatmul.mubr.bf16.vlgmr.msra.gmra.mxu1 %v4057_v27  ;;  %3323 = vmatpush1.bf16.msra.mxu0 %v4701_v22  ;;  %v4738_v22 = vld [vmem:[%s6745_s1 + $0x520] ss:$8 sps:$4 sm:$0xff]   ;;  %v3979_v27 = vld [vmem:[%s5256_s14 + $0x10] sm:$0xee] }
  0x96   : > { %3396 = vmatpush1.bf16.msra.mxu1 %v4704_v30  ;;  %3324 = vmatprep.subr.bf16.mxu0 %v4709_v31  ;;  %v3981_v30 = vld [vmem:[%s5256_s14 + $0x20] sm:$0xee]  ;;  %v3982_v31 = vld [vmem:[%s5256_s14 + $0x28] sm:$0x11]  ;;  %v3995_v34 = vrot.slane %v3979_v27, 9 }
  0x97   : > { %3397 = vmatprep.subr.bf16.mxu1 %v4712_v32  ;;  %3218 = vmatprep.mubr.bf16.mxu0 %v4074_v33  ;;  %v424_v32 = vrot.slane %v422_v23, 4  ;;  %v427_v33 = vrot.slane %v425_v24, 5  ;;  %v3996_v36 = vrot.slane %v3981_v30, 9  ;;  %v3968_v23 = vld [vmem:[%s5256_s14 + $0x38] sm:$0x11] }
  0x98   : > { %3291 = vmatprep.mubr.bf16.mxu1 %v4076_v49  ;;  %v447_v49 = vrot.slane %v445_v26, 5  ;;  %v5764_v48 = vsel %vm5498_vm5, %v3995_v34, %v583_v35  ;;  %v4785_v24 = vld [vmem:[%s6745_s1 + $0x4a0] ss:$8 sps:$4 sm:$0xff]   ;;  %v4793_v30 = vld [vmem:[%s6745_s1 + $0x494] ss:$8 sps:$4 sm:$0xff]  }
  0x99   : > { %3325 = vmatpush1.bf16.msra.mxu0 %v4707_v40  ;;  %v587_v40 = vrot.slane %v3982_v31, 5  ;;  %v3970_v26 = vld [vmem:[%s5256_s14 + $0x48] sm:$0x11]  ;;  %v459_v31 = vshll.u32 %v3968_v23, 16  ;;  %v4794_v34 = vld [vmem:[%s6745_s1 + $0x590] ss:$8 sps:$4 sm:$0xff]  }
  0x9a   : > { %3398 = vmatpush1.bf16.msra.mxu1 %v4710_v43  ;;  %3326 = vmatprep.subr.bf16.mxu0 %v4715_v44  ;;  %v428_v43 = vor.u32 %v427_v33, %v424_v32  ;;  %v433_v44 = vrot.slane %v431_v25, 5  ;;  %v4788_v25 = vld [vmem:[%s6745_s1 + $0x5a0] ss:$8 sps:$4 sm:$0xff]   ;;  %v4796_v32 = vld [vmem:[%s6745_s1 + $0x594] ss:$8 sps:$4 sm:$0xff]   ;;  %v473_v33 = vshll.u32 %v3970_v26, 16 }
  0x9b   : > { %3399 = vmatprep.subr.bf16.mxu1 %v4718_v45  ;;  %v4109_v45 = vcombine.low %v5713_v6, %v371_v8  ;;  %v5768_v50 = vsel %vm5498_vm5, %v3996_v36, %v587_v40  ;;  %v4767_v6 = vld [vmem:[%s6745_s1 + $0x4d0] ss:$8 sps:$4 sm:$0xff]   ;;  %v478_v40 = vshrl.u32 %v5878_v29, 16  ;;  %v4811_v23 = vld [vmem:[%s6745_s1 + $0x664] ss:$8 sps:$4 sm:$0xff]  }
  0x9c   : > { %3219 = vmatmul.mubr.bf16.gmra.mxu0 %v4073_v52  ;;  %v4751_v52 = vld [vmem:[%s6745_s1 + $0x404] ss:$8 sps:$4 sm:$0xff]   ;;  %v4770_v8 = vld [vmem:[%s6745_s1 + $0x5d0] ss:$8 sps:$4 sm:$0xff]  }
  0x9d   : > { %3292 = vmatmul.mubr.bf16.gmra.mxu1 %v4075_v53  ;;  %3327 = vmatpush1.bf16.msra.mxu0 %v4713_v47  ;;  %v4111_v47 = vcombine.low %v5467_v42, %v5718_v9  ;;  %v429_v53 = vrot.slane %v428_v43, 4  ;;  %v5779_v42 = vsel %vm5304_vm2, %v5411_v1, %v447_v49  ;;  %v4749_v1 = vld [vmem:[%s6745_s1 + $0x400] ss:$8 sps:$4 sm:$0xff]   ;;  %v3983_v49 = vld [vmem:[%s5256_s14 + $0x30] sm:$0xee]  ;;  %v481_v43 = vshll.u32 %v5878_v29, 16 }
  0x9e   : > { %3400 = vmatpush1.bf16.msra.mxu1 %v4716_v56  ;;  %3328 = vmatprep.subr.bf16.mxu0 %v4723_v57  ;;  %v4062_v56 = vcombine.high %v5764_v48, %v5768_v50  ;;  %v3984_v36 = vld [vmem:[%s5256_s14 + $0x38] sm:$0x11] }
  0x9f   : > { %3401 = vmatprep.subr.bf16.mxu1 %v4726_v58  ;;  %3228 = vmatprep.mubr.bf16.mxu0 %v4092_v59  ;;  %v5786_v55 = vsel %vm5304_vm2, %v429_v53, %v433_v44  ;;  %v4752_v58 = vld [vmem:[%s6745_s1 + $0x500] ss:$8 sps:$4 sm:$0xff]   ;;  %v4757_v59 = vld [vmem:[%s6745_s1 + $0x4f4] ss:$8 sps:$4 sm:$0xff]   ;;  %v4799_v44 = vld [vmem:[%s6745_s1 + $0x484] ss:$8 sps:$4 sm:$0xff]  }
  0xa0   : > { %3301 = vmatprep.mubr.bf16.mxu1 %v4094_v38  ;;  %v4060_v57 = vcombine.high %v5786_v55, %v5779_v42  ;;  %v4760_v38 = vld [vmem:[%s6745_s1 + $0x5f4] ss:$8 sps:$4 sm:$0xff]   ;;  %v523_v53 = vshll.u32 %v5718_v9, 16 }
  0xa1   : > { %3329 = vmatpush1.bf16.msra.mxu0 %v4721_v63  ;;  %v4761_v63 = vld [vmem:[%s6745_s1 + $0x4e0] ss:$8 sps:$4 sm:$0xff]  }
  0xa2   : > { %3402 = vmatpush1.bf16.msra.mxu1 %v4724_v0  ;;  %3330 = vmatprep.subr.bf16.mxu0 %v4729_v2  ;;  %v4764_v0 = vld [vmem:[%s6745_s1 + $0x5e0] ss:$8 sps:$4 sm:$0xff]   ;;  %v4769_v2 = vld [vmem:[%s6745_s1 + $0x4d4] ss:$8 sps:$4 sm:$0xff]  }
  0xa3   : > { %3403 = vmatprep.subr.bf16.mxu1 %v4732_v3  ;;  %v4772_v3 = vld [vmem:[%s6745_s1 + $0x5d4] ss:$8 sps:$4 sm:$0xff]  }
  0xa4   : > { %3229 = vmatmul.mubr.bf16.gmra.mxu0 %v4091_v11  ;;  %v4775_v11 = vld [vmem:[%s6745_s1 + $0x4c4] ss:$8 sps:$4 sm:$0xff]  }
  0xa5   : > { %3302 = vmatmul.mubr.bf16.gmra.mxu1 %v4093_v15  ;;  %3331 = vmatpush1.bf16.msra.mxu0 %v4727_v12  ;;  %v4778_v12 = vld [vmem:[%s6745_s1 + $0x5c4] ss:$8 sps:$4 sm:$0xff]   ;;  %v4773_v15 = vld [vmem:[%s6745_s1 + $0x4c0] ss:$8 sps:$4 sm:$0xff]  }
  0xa6   : > { %3404 = vmatpush1.bf16.msra.mxu1 %v4730_v14  ;;  %3332 = vmatprep.subr.bf16.mxu0 %v4737_v16  ;;  %v5841_v14 = vld [vmem:[%s5256_s14 + $0x30] sm:$0xff]  ;;  %v4776_v16 = vld [vmem:[%s6745_s1 + $0x5c0] ss:$8 sps:$4 sm:$0xff]  }
  0xa7   : > { %3405 = vmatprep.subr.bf16.mxu1 %v4740_v17  ;;  %3238 = vmatprep.mubr.bf16.mxu0 %v4110_v18  ;;  %v4781_v17 = vld [vmem:[%s6745_s1 + $0x4b4] ss:$8 sps:$4 sm:$0xff]   ;;  %v453_v41 = vshll.u32 %v5841_v14, 16 }
  0xa8   : > { %3311 = vmatprep.mubr.bf16.mxu1 %v4112_v5  ;;  %v4784_v18 = vld [vmem:[%s6745_s1 + $0x5b4] ss:$8 sps:$4 sm:$0xff]   ;;  %v450_v5 = vshrl.u32 %v5841_v14, 16 }
  0xa9   : > { %3333 = vmatpush1.bf16.msra.mxu0 %v4735_v21  ;;  %v4787_v21 = vld [vmem:[%s6745_s1 + $0x4a4] ss:$8 sps:$4 sm:$0xff]  }
  0xaa   : > { %3406 = vmatpush1.bf16.msra.mxu1 %v4738_v22  ;;  %3334 = vmatprep.subr.bf16.mxu0 %v4743_v28  ;;  %v4790_v22 = vld [vmem:[%s6745_s1 + $0x5a4] ss:$8 sps:$4 sm:$0xff]   ;;  %v452_v27 = vrot.slane %v450_v5, 4  ;;  %v455_v28 = vrot.slane %v453_v41, 5 }
  0xab   : > { %3407 = vmatprep.subr.bf16.mxu1 %v4746_v37  ;;  %v4791_v37 = vld [vmem:[%s6745_s1 + $0x490] ss:$8 sps:$4 sm:$0xff]  }
  0xac   : > { %3239 = vmatmul.mubr.bf16.gmra.mxu0 %v4109_v45  ;;  %v456_v35 = vor.u32 %v455_v28, %v452_v27  ;;  %v4802_v45 = vld [vmem:[%s6745_s1 + $0x584] ss:$8 sps:$4 sm:$0xff]  }
  0xad   : > { %3312 = vmatmul.mubr.bf16.gmra.mxu1 %v4111_v47  ;;  %3335 = vmatpush1.bf16.msra.mxu0 %v4741_v46  ;;  %v3985_v46 = vld [vmem:[%s5256_s14 + $0x40] sm:$0xee]  ;;  %v520_v47 = vshrl.u32 %v5718_v9, 16  ;;  %v483_v9 = vrot.slane %v481_v43, 5  ;;  %v4817_v43 = vld [vmem:[%s6745_s1 + $0x654] ss:$8 sps:$4 sm:$0xff]  }
  0xae   : > { %3408 = vmatpush1.bf16.msra.mxu1 %v4744_v51  ;;  %3336 = vmatprep.subr.bf16.mxu0 %v4751_v52  ;;  %v461_v51 = vrot.slane %v459_v31, 5  ;;  %v3986_v52 = vld [vmem:[%s5256_s14 + $0x48] sm:$0x11] }
  0xaf   : > { %3409 = vmatprep.subr.bf16.mxu1 %v4754_v54  ;;  %3354 = vmatprep.mubr.bf16.mxu0 %v4060_v57  ;;  %v475_v54 = vrot.slane %v473_v33, 5  ;;  %v3974_v57 = vld [vmem:[%s5256_s14 + $0x68] sm:$0x11] }
  0xb0   : > { %3427 = vmatprep.mubr.bf16.mxu1 %v4062_v56  ;;  %v3972_v56 = vld [vmem:[%s5256_s14 + $0x58] sm:$0x11]  ;;  %v4809_v33 = vld [vmem:[%s6745_s1 + $0x660] ss:$8 sps:$4 sm:$0xff]  }
  0xb1   : > { %3337 = vmatpush1.bf16.msra.mxu0 %v4749_v1  ;;  %v4797_v1 = vld [vmem:[%s6745_s1 + $0x480] ss:$8 sps:$4 sm:$0xff]  }
  0xb2   : > { %3410 = vmatpush1.bf16.msra.mxu1 %v4752_v58  ;;  %3338 = vmatprep.subr.bf16.mxu0 %v4757_v59  ;;  %v4800_v58 = vld [vmem:[%s6745_s1 + $0x580] ss:$8 sps:$4 sm:$0xff]   ;;  %v5914_v59 = vrot.slane %v456_v35, 4 }
  0xb3   : > { %3411 = vmatprep.subr.bf16.mxu1 %v4760_v38  ;;  %v3997_v38 = vrot.slane %v3983_v49, 9 }
  0xb4   : > { %v5944_v5 = vsel %vm5304_vm2, %v5914_v59, %v461_v51 }
  0xb5   : > { %3339 = vmatpush2.bf16.msra.mxu0 %v4755_v4  ;;  %v480_v4 = vrot.slane %v478_v40, 4  ;;  %v4812_v40 = vld [vmem:[%s6745_s1 + $0x760] ss:$8 sps:$4 sm:$0xff]  }
  0xb6   : > { %3412 = vmatpush2.bf16.msra.mxu1 %v4758_v60  ;;  %3340 = vmatprep.subr.bf16.mxu0 %v4763_v61  ;;  %v4805_v60 = vld [vmem:[%s6745_s1 + $0x674] ss:$8 sps:$4 sm:$0xff]  }
  0xb7   : > { %3413 = vmatprep.subr.bf16.mxu1 %v4766_v62  ;;  %v4808_v61 = vld [vmem:[%s6745_s1 + $0x774] ss:$8 sps:$4 sm:$0xff]   ;;  %v591_v62 = vrot.slane %v3984_v36, 5  ;;  %v484_v41 = vor.u32 %v483_v9, %v480_v4 }
  0xb9   : > { %3341 = vmatpush2.bf16.msra.mxu0 %v4761_v63  ;;  %v3998_v63 = vrot.slane %v3985_v46, 9 }
  0xba   : > { %3414 = vmatpush2.bf16.msra.mxu1 %v4764_v0  ;;  %3342 = vmatprep.subr.bf16.mxu0 %v4769_v2  ;;  %v595_v0 = vrot.slane %v3986_v52, 5  ;;  %v5923_v2 = vld [vmem:[%s5256_s14 + $0x70] sm:$0xff] }
  0xbb   : > { %3415 = vmatprep.subr.bf16.mxu1 %v4772_v3  ;;  %v487_v3 = vshll.u32 %v3972_v56, 16 }
  0xbc   : > { %v5965_v26 = vsel %vm5498_vm5, %v3998_v63, %v595_v0  ;;  %v3994_v63 = vld [vmem:[%s5256_s14 + $0x88] sm:$0x11] }
  0xbd   : > { %3343 = vmatpush2.bf16.msra.mxu0 %v4767_v6  ;;  %v501_v6 = vshll.u32 %v3974_v57, 16  ;;  %v4826_v0 = vld [vmem:[%s6745_s1 + $0x744] ss:$8 sps:$4 sm:$0xff]  }
  0xbe   : > { %3416 = vmatpush2.bf16.msra.mxu1 %v4770_v8  ;;  %3344 = vmatprep.subr.bf16.mxu0 %v4775_v11  ;;  %v3987_v8 = vld [vmem:[%s5256_s14 + $0x50] sm:$0xee]  ;;  %v5929_v11 = vsel %vm5304_vm2, %v5461_v39, %v475_v54  ;;  %v3990_v39 = vld [vmem:[%s5256_s14 + $0x68] sm:$0x11] }
  0xbf   : > { %3417 = vmatprep.subr.bf16.mxu1 %v4778_v12  ;;  %v3988_v12 = vld [vmem:[%s5256_s14 + $0x58] sm:$0x11]  ;;  %v4078_v27 = vcombine.high %v5944_v5, %v5929_v11  ;;  %v603_v31 = vrot.slane %v3990_v39, 5  ;;  %v4077_v4 = vcombine.low %v5944_v5, %v5929_v11 }
  0xc0   : > { %v599_v28 = vrot.slane %v3988_v12, 5  ;;  %v4818_v54 = vld [vmem:[%s6745_s1 + $0x750] ss:$8 sps:$4 sm:$0xff]   ;;  %v6028_v12 = vld [vmem:[%s5256_s14 + $0x20] sm:$0xff] }
  0xc1   : > { %3345 = vmatpush2.bf16.msra.mxu0 %v4773_v15  ;;  %v3989_v15 = vld [vmem:[%s5256_s14 + $0x60] sm:$0xee]  ;;  %v663_v5 = vshrl.u32 %v6028_v12, 16 }
  0xc2   : > { %3418 = vmatpush2.bf16.msra.mxu1 %v4776_v16  ;;  %3346 = vmatprep.subr.bf16.mxu0 %v4781_v17  ;;  %v5933_v16 = vrot.slane %v520_v47, 4  ;;  %v4803_v17 = vld [vmem:[%s6745_s1 + $0x670] ss:$8 sps:$4 sm:$0xff]  }
  0xc3   : > { %3419 = vmatprep.subr.bf16.mxu1 %v4784_v18  ;;  %v4806_v18 = vld [vmem:[%s6745_s1 + $0x770] ss:$8 sps:$4 sm:$0xff]  }
  0xc5   : > { %3347 = vmatpush2.bf16.msra.mxu0 %v4779_v19  ;;  %v506_v19 = vshrl.u32 %v5923_v2, 16 }
  0xc6   : > { %3420 = vmatpush2.bf16.msra.mxu1 %v4782_v20  ;;  %3348 = vmatprep.subr.bf16.mxu0 %v4787_v21  ;;  %v509_v20 = vshll.u32 %v5923_v2, 16  ;;  %v4059_v21 = vcombine.low %v5786_v55, %v5779_v42  ;;  %v3999_v42 = vrot.slane %v3987_v8, 9  ;;  %v525_v55 = vrot.slane %v523_v53, 5  ;;  %v4815_v53 = vld [vmem:[%s6745_s1 + $0x650] ss:$8 sps:$4 sm:$0xff]  }
  0xc7   : > { %3421 = vmatprep.subr.bf16.mxu1 %v4790_v22  ;;  %v4061_v22 = vcombine.low %v5764_v48, %v5768_v50  ;;  %v489_v48 = vrot.slane %v487_v3, 5  ;;  %v503_v50 = vrot.slane %v501_v6, 5  ;;  %v508_v35 = vrot.slane %v506_v19, 4 }
  0xc8   : > { %v511_v36 = vrot.slane %v509_v20, 5  ;;  %v5990_v46 = vsel %vm5498_vm5, %v3999_v42, %v599_v28  ;;  %v611_v19 = vrot.slane %v3994_v63, 5  ;;  %v4012_v20 = vld [vmem:[%s5256_s14 + $0x28] sm:$0x11]  ;;  %v4854_v63 = vld [vmem:[%s6745_s1 + $0x7f0] ss:$8 sps:$4 sm:$0xff]  }
  0xc9   : > { %3349 = vmatpush2.bf16.msra.mxu0 %v4785_v24  ;;  %v4814_v24 = vld [vmem:[%s6745_s1 + $0x764] ss:$8 sps:$4 sm:$0xff]   ;;  %v504_v57 = vsel %vm5304_vm2, %v5508_v13, %v503_v50 }
  0xca   : > { %3422 = vmatpush2.bf16.msra.mxu1 %v4788_v25  ;;  %3350 = vmatprep.subr.bf16.mxu0 %v4793_v30  ;;  %v5961_v25 = vsel %vm5498_vm5, %v3997_v38, %v591_v62  ;;  %v4000_v30 = vrot.slane %v3989_v15, 9  ;;  %v3992_v38 = vld [vmem:[%s5256_s14 + $0x78] sm:$0x11]  ;;  %v4821_v15 = vld [vmem:[%s6745_s1 + $0x640] ss:$8 sps:$4 sm:$0xff]  }
  0xcb   : > { %3423 = vmatprep.subr.bf16.mxu1 %v4796_v32  ;;  %v3976_v32 = vld [vmem:[%s5256_s14 + $0x78] sm:$0x11]  ;;  %v4080_v49 = vcombine.high %v5961_v25, %v5965_v26  ;;  %v4079_v9 = vcombine.low %v5961_v25, %v5965_v26 }
  0xcc   : > { %v5994_v47 = vsel %vm5498_vm5, %v4000_v30, %v603_v31  ;;  %v515_v51 = vshll.u32 %v3976_v32, 16  ;;  %v4829_v25 = vld [vmem:[%s6745_s1 + $0x634] ss:$8 sps:$4 sm:$0xff]   ;;  %v672_v30 = vshll.u32 %v4012_v20, 16  ;;  %v4827_v32 = vld [vmem:[%s6745_s1 + $0x630] ss:$8 sps:$4 sm:$0xff]  }
  0xcd   : > { %3351 = vmatpush2.bf16.msra.mxu0 %v4791_v37  ;;  %v5975_v37 = vrot.slane %v484_v41, 4  ;;  %v4098_v13 = vcombine.high %v5990_v46, %v5994_v47  ;;  %v666_v41 = vshll.u32 %v6028_v12, 16  ;;  %v4832_v26 = vld [vmem:[%s6745_s1 + $0x734] ss:$8 sps:$4 sm:$0xff]   ;;  %v4872_v20 = vld [vmem:[%s6745_s1 + $0x7c0] ss:$8 sps:$4 sm:$0xff]  }
  0xce   : > { %3424 = vmatpush2.bf16.msra.mxu1 %v4794_v34  ;;  %3352 = vmatprep.subr.bf16.mxu0 %v4799_v44  ;;  %v3978_v34 = vld [vmem:[%s5256_s14 + $0x88] sm:$0x11]  ;;  %v526_v44 = vor.u32 %v525_v55, %v5933_v16  ;;  %v517_v6 = vrot.slane %v515_v51, 5  ;;  %v4844_v51 = vld [vmem:[%s6745_s1 + $0x714] ss:$8 sps:$4 sm:$0xff]  }
  0xcf   : > { %3425 = vmatprep.subr.bf16.mxu1 %v4802_v45  ;;  %v4820_v45 = vld [vmem:[%s6745_s1 + $0x754] ss:$8 sps:$4 sm:$0xff]   ;;  %v529_v52 = vshll.u32 %v3978_v34, 16  ;;  %v6005_v56 = vsel %vm5304_vm2, %v5975_v37, %v489_v48  ;;  %v4824_v16 = vld [vmem:[%s6745_s1 + $0x740] ss:$8 sps:$4 sm:$0xff]   ;;  %v4097_v48 = vcombine.low %v5990_v46, %v5994_v47 }
  0xd0   : > { %v527_v62 = vrot.slane %v526_v44, 4  ;;  %v4096_v3 = vcombine.high %v6005_v56, %v504_v57  ;;  %v4838_v34 = vld [vmem:[%s6745_s1 + $0x724] ss:$8 sps:$4 sm:$0xff]   ;;  %v4836_v46 = vld [vmem:[%s6745_s1 + $0x720] ss:$8 sps:$4 sm:$0xff]  }
  0xd1   : > { %3353 = vmatpush2.bf16.msra.mxu0 %v4797_v1  ;;  %v512_v1 = vor.u32 %v511_v36, %v508_v35  ;;  %v531_v8 = vrot.slane %v529_v52, 5  ;;  %v4841_v47 = vld [vmem:[%s6745_s1 + $0x614] ss:$8 sps:$4 sm:$0xff]  }
  0xd2   : > { %3426 = vmatpush2.bf16.msra.mxu1 %v4800_v58  ;;  %3468 = vmatprep.subr.bf16.mxu0 %v4805_v60  ;;  %v3991_v58 = vld [vmem:[%s5256_s14 + $0x70] sm:$0xee]  ;;  %v4823_v60 = vld [vmem:[%s6745_s1 + $0x644] ss:$8 sps:$4 sm:$0xff]  }
  0xd3   : > { %3541 = vmatprep.subr.bf16.mxu1 %v4808_v61  ;;  %v3993_v61 = vld [vmem:[%s5256_s14 + $0x80] sm:$0xee]  ;;  %v4001_v11 = vrot.slane %v3991_v58, 9  ;;  %v532_v42 = vsel %vm5304_vm2, %v527_v62, %v531_v8  ;;  %v4851_v62 = vld [vmem:[%s6745_s1 + $0x6f0] ss:$8 sps:$4 sm:$0xff]  }
  0xd4   : > { %3355 = vmatmul.mubr.bf16.vlgmr.msra.gmra.mxu0 %v4059_v21  ;;  %v4002_v39 = vrot.slane %v3993_v61, 9  ;;  %v4014_v21 = vld [vmem:[%s5256_s14 + $0x38] sm:$0x11]  ;;  %v4847_v58 = vld [vmem:[%s6745_s1 + $0x604] ss:$8 sps:$4 sm:$0xff]  }
  0xd5   : > { %3428 = vmatmul.mubr.bf16.vlgmr.msra.gmra.mxu1 %v4061_v22  ;;  %3469 = vmatpush1.bf16.msra.mxu0 %v4803_v17  ;;  %v6036_v17 = vrot.slane %v512_v1, 4  ;;  %v665_v22 = vrot.slane %v663_v5, 4  ;;  %v686_v31 = vshll.u32 %v4014_v21, 16  ;;  %v4842_v1 = vld [vmem:[%s6745_s1 + $0x710] ss:$8 sps:$4 sm:$0xff]  }
  0xd6   : > { %3542 = vmatpush1.bf16.msra.mxu1 %v4806_v18  ;;  %3470 = vmatprep.subr.bf16.mxu0 %v4811_v23  ;;  %v607_v18 = vrot.slane %v3992_v38, 5  ;;  %v668_v23 = vrot.slane %v666_v41, 5  ;;  %v4064_v38 = vcombine.high %v6028_v12, %v5841_v14  ;;  %v4853_v61 = vld [vmem:[%s6745_s1 + $0x6f4] ss:$8 sps:$4 sm:$0xff]   ;;  %v4860_v8 = vld [vmem:[%s6745_s1 + $0x7e0] ss:$8 sps:$4 sm:$0xff]  }
  0xd7   : > { %3543 = vmatprep.subr.bf16.mxu1 %v4814_v24  ;;  %3364 = vmatprep.mubr.bf16.mxu0 %v4078_v27  ;;  %v4095_v24 = vcombine.low %v6005_v56, %v504_v57  ;;  %v518_v50 = vsel %vm5304_vm2, %v6036_v17, %v517_v6  ;;  %v612_v27 = vsel %vm5498_vm5, %v4002_v39, %v611_v19  ;;  %v688_v44 = vrot.slane %v686_v31, 5  ;;  %v4839_v57 = vld [vmem:[%s6745_s1 + $0x610] ss:$8 sps:$4 sm:$0xff]   ;;  %v4857_v6 = vld [vmem:[%s6745_s1 + $0x6e0] ss:$8 sps:$4 sm:$0xff]  }
  0xd8   : > { %3437 = vmatprep.mubr.bf16.mxu1 %v4080_v49  ;;  %v608_v55 = vsel %vm5498_vm5, %v4001_v11, %v607_v18  ;;  %v669_v28 = vor.u32 %v668_v23, %v665_v22  ;;  %v4835_v49 = vld [vmem:[%s6745_s1 + $0x624] ss:$8 sps:$4 sm:$0xff]   ;;  %v4114_v35 = vcombine.high %v518_v50, %v532_v42  ;;  %v4113_v52 = vcombine.low %v518_v50, %v532_v42  ;;  %v4865_v11 = vld [vmem:[%s6745_s1 + $0x6d4] ss:$8 sps:$4 sm:$0xff]   ;;  %v4866_v18 = vld [vmem:[%s6745_s1 + $0x7d0] ss:$8 sps:$4 sm:$0xff]  }
  0xd9   : > { %3471 = vmatpush1.bf16.msra.mxu0 %v4809_v33  ;;  %v4830_v33 = vld [vmem:[%s6745_s1 + $0x730] ss:$8 sps:$4 sm:$0xff]   ;;  %v4116_v36 = vcombine.high %v608_v55, %v612_v27  ;;  %v6091_v56 = vsel %vm5304_vm2, %v5914_v59, %v688_v44  ;;  %v4850_v59 = vld [vmem:[%s6745_s1 + $0x704] ss:$8 sps:$4 sm:$0xff]   ;;  %v4869_v19 = vld [vmem:[%s6745_s1 + $0x6c0] ss:$8 sps:$4 sm:$0xff]  }
  0xda   : > { %3544 = vmatpush1.bf16.msra.mxu1 %v4812_v40  ;;  %3472 = vmatprep.subr.bf16.mxu0 %v4817_v43  ;;  %v670_v40 = vrot.slane %v669_v28, 4  ;;  %v674_v43 = vrot.slane %v672_v30, 5  ;;  %v4871_v5 = vld [vmem:[%s6745_s1 + $0x6c4] ss:$8 sps:$4 sm:$0xff]   ;;  %v4877_v21 = vld [vmem:[%s6745_s1 + $0x6b4] ss:$8 sps:$4 sm:$0xff]  }
  0xdb   : > { %3545 = vmatprep.subr.bf16.mxu1 %v4820_v45  ;;  %v4833_v45 = vld [vmem:[%s6745_s1 + $0x620] ss:$8 sps:$4 sm:$0xff]   ;;  %v4874_v41 = vld [vmem:[%s6745_s1 + $0x7c4] ss:$8 sps:$4 sm:$0xff]   ;;  %v4880_v22 = vld [vmem:[%s6745_s1 + $0x7b4] ss:$8 sps:$4 sm:$0xff]  }
  0xdc   : > { %3365 = vmatmul.mubr.bf16.gmra.mxu0 %v4077_v4  ;;  %v6158_v39 = vld [vmem:[%s5256_s14 + $0x40] sm:$0xff]  ;;  %v4018_v28 = vld [vmem:[%s5256_s14 + $0x58] sm:$0x11] }
  0xdd   : > { %3438 = vmatmul.mubr.bf16.gmra.mxu1 %v4079_v9  ;;  %3473 = vmatpush1.bf16.msra.mxu0 %v4815_v53  ;;  %v4115_v53 = vcombine.low %v608_v55, %v612_v27  ;;  %v4845_v9 = vld [vmem:[%s6745_s1 + $0x600] ss:$8 sps:$4 sm:$0xff]   ;;  %v691_v23 = vshrl.u32 %v6158_v39, 16  ;;  %v4886_v50 = vld [vmem:[%s6745_s1 + $0x7a4] ss:$8 sps:$4 sm:$0xff]  }
  0xde   : > { %3546 = vmatpush1.bf16.msra.mxu1 %v4818_v54  ;;  %3474 = vmatprep.subr.bf16.mxu0 %v4823_v60  ;;  %v6086_v54 = vsel %vm5304_vm2, %v670_v40, %v674_v43  ;;  %v4848_v60 = vld [vmem:[%s6745_s1 + $0x700] ss:$8 sps:$4 sm:$0xff]   ;;  %v4887_v44 = vld [vmem:[%s6745_s1 + $0x690] ss:$8 sps:$4 sm:$0xff]  }
  0xdf   : > { %3547 = vmatprep.subr.bf16.mxu1 %v4826_v0  ;;  %3374 = vmatprep.mubr.bf16.mxu0 %v4096_v3  ;;  %v4066_v4 = vcombine.high %v6086_v54, %v6091_v56  ;;  %v4859_v0 = vld [vmem:[%s6745_s1 + $0x6e4] ss:$8 sps:$4 sm:$0xff]   ;;  %v693_v42 = vrot.slane %v691_v23, 4  ;;  %v4881_v30 = vld [vmem:[%s6745_s1 + $0x6a0] ss:$8 sps:$4 sm:$0xff]  }
  0xe0   : > { %3447 = vmatprep.mubr.bf16.mxu1 %v4098_v13  ;;  %v4856_v13 = vld [vmem:[%s6745_s1 + $0x7f4] ss:$8 sps:$4 sm:$0xff]   ;;  %v4862_v3 = vld [vmem:[%s6745_s1 + $0x7e4] ss:$8 sps:$4 sm:$0xff]   ;;  %v4884_v31 = vld [vmem:[%s6745_s1 + $0x7a0] ss:$8 sps:$4 sm:$0xff]  }
  0xe1   : > { %3475 = vmatpush1.bf16.msra.mxu0 %v4821_v15  ;;  %v4868_v15 = vld [vmem:[%s6745_s1 + $0x7d4] ss:$8 sps:$4 sm:$0xff]   ;;  %v4016_v27 = vld [vmem:[%s5256_s14 + $0x48] sm:$0x11] }
  0xe2   : > { %3548 = vmatpush1.bf16.msra.mxu1 %v4824_v16  ;;  %3476 = vmatprep.subr.bf16.mxu0 %v4829_v25  ;;  %v4863_v16 = vld [vmem:[%s6745_s1 + $0x6d0] ss:$8 sps:$4 sm:$0xff]  }
  0xe3   : > { %3549 = vmatprep.subr.bf16.mxu1 %v4832_v26  ;;  %v4875_v25 = vld [vmem:[%s6745_s1 + $0x6b0] ss:$8 sps:$4 sm:$0xff]  }
  0xe4   : > { %3375 = vmatmul.mubr.bf16.gmra.mxu0 %v4095_v24  ;;  %v694_v24 = vshll.u32 %v6158_v39, 16  ;;  %v4878_v26 = vld [vmem:[%s6745_s1 + $0x7b0] ss:$8 sps:$4 sm:$0xff]  }
  0xe5   : > { %3448 = vmatmul.mubr.bf16.gmra.mxu1 %v4097_v48  ;;  %3477 = vmatpush1.bf16.msra.mxu0 %v4827_v32  ;;  %v4883_v48 = vld [vmem:[%s6745_s1 + $0x6a4] ss:$8 sps:$4 sm:$0xff]  }
  0xe6   : > { %3550 = vmatpush1.bf16.msra.mxu1 %v4830_v33  ;;  %3478 = vmatprep.subr.bf16.mxu0 %v4835_v49  ;;  %v696_v55 = vrot.slane %v694_v24, 5  ;;  %v6195_v32 = vld [vmem:[%s5256_s14 + $0x60] sm:$0xff]  ;;  %v4889_v33 = vld [vmem:[%s6745_s1 + $0x694] ss:$8 sps:$4 sm:$0xff]  }
  0xe7   : > { %3551 = vmatprep.subr.bf16.mxu1 %v4838_v34  ;;  %3384 = vmatprep.mubr.bf16.mxu0 %v4114_v35  ;;  %v4892_v49 = vld [vmem:[%s6745_s1 + $0x794] ss:$8 sps:$4 sm:$0xff]   ;;  %v700_v35 = vshll.u32 %v4016_v27, 16  ;;  %v719_v40 = vshrl.u32 %v6195_v32, 16  ;;  %v722_v43 = vshll.u32 %v6195_v32, 16 }
  0xe8   : > { %3457 = vmatprep.mubr.bf16.mxu1 %v4116_v36  ;;  %v697_v34 = vor.u32 %v696_v55, %v693_v42  ;;  %v714_v36 = vshll.u32 %v4018_v28, 16  ;;  %v4911_v27 = vld [vmem:[%s6745_s1 + $0x854] ss:$8 sps:$4 sm:$0xff]  }
  0xe9   : > { %3479 = vmatpush1.bf16.msra.mxu0 %v4833_v45  ;;  %v4890_v45 = vld [vmem:[%s6745_s1 + $0x790] ss:$8 sps:$4 sm:$0xff]  }
  0xea   : > { %3552 = vmatpush1.bf16.msra.mxu1 %v4836_v46  ;;  %3480 = vmatprep.subr.bf16.mxu0 %v4841_v47  ;;  %v4895_v46 = vld [vmem:[%s6745_s1 + $0x684] ss:$8 sps:$4 sm:$0xff]  }
  0xeb   : > { %3553 = vmatprep.subr.bf16.mxu1 %v4844_v51  ;;  %v4898_v47 = vld [vmem:[%s6745_s1 + $0x784] ss:$8 sps:$4 sm:$0xff]   ;;  %v698_v51 = vrot.slane %v697_v34, 4 }
  0xec   : > { %3385 = vmatmul.mubr.bf16.gmra.mxu0 %v4113_v52  ;;  %v702_v52 = vrot.slane %v700_v35, 5 }
  0xed   : > { %3458 = vmatmul.mubr.bf16.gmra.mxu1 %v4115_v53  ;;  %3481 = vmatpush1.bf16.msra.mxu0 %v4839_v57  ;;  %v716_v53 = vrot.slane %v714_v36, 5  ;;  %v4893_v57 = vld [vmem:[%s6745_s1 + $0x680] ss:$8 sps:$4 sm:$0xff]   ;;  %v4081_v36 = vcombine.low %v6158_v39, %v5878_v29 }
  0xee   : > { %3554 = vmatpush1.bf16.msra.mxu1 %v4842_v1  ;;  %3482 = vmatprep.subr.bf16.mxu0 %v4847_v58  ;;  %v721_v1 = vrot.slane %v719_v40, 4  ;;  %v724_v58 = vrot.slane %v722_v43, 5 }
  0xef   : > { %3555 = vmatprep.subr.bf16.mxu1 %v4850_v59  ;;  %3500 = vmatprep.mubr.bf16.mxu0 %v4064_v38  ;;  %v6221_v59 = vld [vmem:[%s5256_s14 + $0x80] sm:$0xff]  ;;  %v6224_v38 = vld [vmem:[%s5256_s14 + $0x90] sm:$0xff] }
  0xf0   : > { %3573 = vmatprep.mubr.bf16.mxu1 %v4066_v4  ;;  %v4896_v4 = vld [vmem:[%s6745_s1 + $0x780] ss:$8 sps:$4 sm:$0xff]  }
  0xf1   : > { %3483 = vmatpush1.bf16.msra.mxu0 %v4845_v9  ;;  %v4020_v9 = vld [vmem:[%s5256_s14 + $0x68] sm:$0x11] }
  0xf2   : > { %3556 = vmatpush1.bf16.msra.mxu1 %v4848_v60  ;;  %3484 = vmatprep.subr.bf16.mxu0 %v4853_v61  ;;  %v4022_v60 = vld [vmem:[%s5256_s14 + $0x78] sm:$0x11]  ;;  %v4063_v61 = vcombine.low %v6028_v12, %v5841_v14  ;;  %v761_v14 = vshrl.u32 %v6224_v38, 16  ;;  %v764_v12 = vshll.u32 %v6224_v38, 16 }
  0xf3   : > { %3557 = vmatprep.subr.bf16.mxu1 %v4856_v13  ;;  %v4903_v13 = vld [vmem:[%s6745_s1 + $0x874] ss:$8 sps:$4 sm:$0xff]  }
  0xf5   : > { %3485 = vmatpush2.bf16.msra.mxu0 %v4851_v62  ;;  %v6238_v62 = vsel %vm5304_vm2, %v698_v51, %v702_v52  ;;  %v4100_v51 = vcombine.high %v6195_v32, %v5923_v2 }
  0xf6   : > { %3558 = vmatpush2.bf16.msra.mxu1 %v4854_v63  ;;  %3486 = vmatprep.subr.bf16.mxu0 %v4859_v0  ;;  %v6243_v63 = vsel %vm5304_vm2, %v5975_v37, %v716_v53  ;;  %v747_v0 = vshrl.u32 %v6221_v59, 16  ;;  %v4901_v37 = vld [vmem:[%s6745_s1 + $0x870] ss:$8 sps:$4 sm:$0xff]  }
  0xf7   : > { %3559 = vmatprep.subr.bf16.mxu1 %v4862_v3  ;;  %v750_v3 = vshll.u32 %v6221_v59, 16  ;;  %v4083_v40 = vcombine.low %v6238_v62, %v6243_v63 }
  0xf9   : > { %3487 = vmatpush2.bf16.msra.mxu0 %v4857_v6  ;;  %v4065_v6 = vcombine.low %v6086_v54, %v6091_v56  ;;  %v4084_v54 = vcombine.high %v6238_v62, %v6243_v63  ;;  %v4024_v56 = vld [vmem:[%s5256_s14 + $0x88] sm:$0x11] }
  0xfa   : > { %3560 = vmatpush2.bf16.msra.mxu1 %v4860_v8  ;;  %3488 = vmatprep.subr.bf16.mxu0 %v4865_v11  ;;  %v725_v8 = vor.u32 %v724_v58, %v721_v1  ;;  %v728_v11 = vshll.u32 %v4020_v9, 16  ;;  %v756_v28 = vshll.u32 %v4024_v56, 16  ;;  %v4912_v9 = vld [vmem:[%s6745_s1 + $0x840] ss:$8 sps:$4 sm:$0xff]  }
  0xfb   : > { %3561 = vmatprep.subr.bf16.mxu1 %v4868_v15  ;;  %v742_v15 = vshll.u32 %v4022_v60, 16  ;;  %v4919_v60 = vld [vmem:[%s6745_s1 + $0x834] ss:$8 sps:$4 sm:$0xff]  }
  0xfc   : > { %v726_v24 = vrot.slane %v725_v8, 4  ;;  %v4029_v8 = vld [vmem:[%s5256_s14 + $0x30] sm:$0xee] }
  0xfd   : > { %3489 = vmatpush2.bf16.msra.mxu0 %v4863_v16  ;;  %v4906_v16 = vld [vmem:[%s6745_s1 + $0x864] ss:$8 sps:$4 sm:$0xff]  }
  0xfe   : > { %3562 = vmatpush2.bf16.msra.mxu1 %v4866_v18  ;;  %3490 = vmatprep.subr.bf16.mxu0 %v4871_v5  ;;  %v4082_v18 = vcombine.high %v6158_v39, %v5878_v29  ;;  %v4026_v5 = vld [vmem:[%s5256_s14 + $0x98] sm:$0x11]  ;;  %v4914_v39 = vld [vmem:[%s6745_s1 + $0x844] ss:$8 sps:$4 sm:$0xff]  }
  0xff   : > { %3563 = vmatprep.subr.bf16.mxu1 %v4874_v41  ;;  %v749_v41 = vrot.slane %v747_v0, 4  ;;  %v4027_v0 = vld [vmem:[%s5256_s14 + $0x20] sm:$0xee] }
 0x100   : > { %v4043_v56 = vrot.slane %v4027_v0, 9 }
 0x101   : > { %3491 = vmatpush2.bf16.msra.mxu0 %v4869_v19  ;;  %v752_v19 = vrot.slane %v750_v3, 5  ;;  %v4028_v3 = vld [vmem:[%s5256_s14 + $0x28] sm:$0x11] }
 0x102   : > { %3564 = vmatpush2.bf16.msra.mxu1 %v4872_v20  ;;  %3492 = vmatprep.subr.bf16.mxu0 %v4877_v21  ;;  %v763_v20 = vrot.slane %v761_v14, 4  ;;  %v766_v21 = vrot.slane %v764_v12, 5  ;;  %v4099_v14 = vcombine.low %v6195_v32, %v5923_v2 }
 0x103   : > { %3565 = vmatprep.subr.bf16.mxu1 %v4880_v22 }
 0x105   : > { %3493 = vmatpush2.bf16.msra.mxu0 %v4875_v25  ;;  %v730_v25 = vrot.slane %v728_v11, 5  ;;  %v4030_v11 = vld [vmem:[%s5256_s14 + $0x38] sm:$0x11] }
 0x106   : > { %3566 = vmatpush2.bf16.msra.mxu1 %v4878_v26  ;;  %3494 = vmatprep.subr.bf16.mxu0 %v4883_v48  ;;  %v744_v26 = vrot.slane %v742_v15, 5  ;;  %v4035_v15 = vld [vmem:[%s5256_s14 + $0x60] sm:$0xee] }
 0x107   : > { %3567 = vmatprep.subr.bf16.mxu1 %v4886_v50  ;;  %v4904_v50 = vld [vmem:[%s6745_s1 + $0x860] ss:$8 sps:$4 sm:$0xff]   ;;  %v731_v43 = vsel %vm5304_vm2, %v726_v24, %v730_v25 }
 0x108   : > { %v4920_v25 = vld [vmem:[%s6745_s1 + $0x820] ss:$8 sps:$4 sm:$0xff]  }
 0x109   : > { %3495 = vmatpush2.bf16.msra.mxu0 %v4881_v30  ;;  %v770_v30 = vshll.u32 %v4026_v5, 16  ;;  %v824_v5 = vrot.slane %v4028_v3, 5 }
 0x10a   : > { %3568 = vmatpush2.bf16.msra.mxu1 %v4884_v31  ;;  %3496 = vmatprep.subr.bf16.mxu0 %v4889_v33  ;;  %v753_v33 = vor.u32 %v752_v19, %v749_v41  ;;  %v4044_v41 = vrot.slane %v4029_v8, 9  ;;  %v828_v19 = vrot.slane %v4030_v11, 5  ;;  %v4939_v11 = vld [vmem:[%s6745_s1 + $0x8d4] ss:$8 sps:$4 sm:$0xff]  }
 0x10b   : > { %3569 = vmatprep.subr.bf16.mxu1 %v4892_v49  ;;  %v767_v49 = vor.u32 %v766_v21, %v763_v20  ;;  %v772_v52 = vrot.slane %v770_v30, 5  ;;  %v4047_v21 = vrot.slane %v4035_v15, 9 }
 0x10c   : > { %v754_v1 = vrot.slane %v753_v33, 4 }
 0x10d   : > { %3497 = vmatpush2.bf16.msra.mxu0 %v4887_v44  ;;  %v745_v44 = vsel %vm5304_vm2, %v6036_v17, %v744_v26  ;;  %v758_v17 = vrot.slane %v756_v28, 5  ;;  %v768_v58 = vrot.slane %v767_v49, 4  ;;  %v6344_v49 = vsel %vm5498_vm5, %v4043_v56, %v824_v5  ;;  %v4940_v5 = vld [vmem:[%s6745_s1 + $0x8c0] ss:$8 sps:$4 sm:$0xff]  }
 0x10e   : > { %3570 = vmatpush2.bf16.msra.mxu1 %v4890_v45  ;;  %3498 = vmatprep.subr.bf16.mxu0 %v4895_v46  ;;  %v4909_v46 = vld [vmem:[%s6745_s1 + $0x850] ss:$8 sps:$4 sm:$0xff]   ;;  %v4101_v12 = vcombine.low %v731_v43, %v745_v44 }
 0x10f   : > { %3571 = vmatprep.subr.bf16.mxu1 %v4898_v47  ;;  %v6305_v62 = vsel %vm5304_vm2, %v754_v1, %v758_v17  ;;  %v6309_v63 = vsel %vm5304_vm2, %v768_v58, %v772_v52  ;;  %v4928_v17 = vld [vmem:[%s6745_s1 + $0x800] ss:$8 sps:$4 sm:$0xff]   ;;  %v4933_v1 = vld [vmem:[%s6745_s1 + $0x8f4] ss:$8 sps:$4 sm:$0xff]  }
 0x110   : > { %v4120_v2 = vcombine.high %v6305_v62, %v6309_v63 }
 0x111   : > { %3499 = vmatpush2.bf16.msra.mxu0 %v4893_v57  ;;  %v4102_v57 = vcombine.high %v731_v43, %v745_v44  ;;  %v4930_v43 = vld [vmem:[%s6745_s1 + $0x804] ss:$8 sps:$4 sm:$0xff]  }
 0x112   : > { %3572 = vmatpush2.bf16.msra.mxu1 %v4896_v4  ;;  %3614 = vmatprep.subr.bf16.mxu0 %v4903_v13 }
 0x113   : > { %4425 = vmatprep.subr.bf16.mxu1 %v4903_v13  ;;  %v4917_v13 = vld [vmem:[%s6745_s1 + $0x830] ss:$8 sps:$4 sm:$0xff]  }
 0x114   : > { %v3064_v22 = vpop.f32.mrf.mxu0  ;;  %3501 = vmatmul.mubr.bf16.vlgmr.msra.gmra.mxu0 %v4063_v61 }
 0x115   : > { %v3137_v23 = vpop.f32.mrf.mxu1  ;;  %3574 = vmatmul.mubr.bf16.vlgmr.msra.gmra.mxu1 %v4065_v6  ;;  %3615 = vmatpush1.bf16.msra.mxu0 %v4901_v37 }
 0x116   : > { %v6263_v48 = vadd.f32 %v3137_v23, %v3064_v22  ;;  %4441 = vmatpush1.bf16.msra.mxu1 %v4901_v37  ;;  %v3066_v42 = vpop.f32.mrf.mxu0  ;;  %3616 = vmatprep.subr.bf16.mxu0 %v4906_v16  ;;  %v4036_v37 = vld [vmem:[%s5256_s14 + $0x68] sm:$0x11] }
 0x117   : > { %v3139_v55 = vpop.f32.mrf.mxu1  ;;  %4426 = vmatprep.subr.bf16.mxu1 %v4906_v16  ;;  %3510 = vmatprep.mubr.bf16.mxu0 %v4082_v18  ;;  %v4037_v16 = vld [vmem:[%s5256_s14 + $0x70] sm:$0xee]  ;;  %v4038_v18 = vld [vmem:[%s5256_s14 + $0x78] sm:$0x11]  ;;  %v840_v22 = vrot.slane %v4036_v37, 5 }
 0x118   : > { %v6271_v31 = vadd.f32 %v3139_v55, %v3066_v42  ;;  %3583 = vmatprep.mubr.bf16.mxu1 %v4084_v54  ;;  %v3068_v34 = vpop.f32.mrf.mxu0  ;;  %v4118_v54 = vcombine.high %v6221_v59, %v6224_v38  ;;  %v4048_v23 = vrot.slane %v4037_v16, 9  ;;  %v844_v24 = vrot.slane %v4038_v18, 5 }
 0x119   : > { %v3141_v35 = vpop.f32.mrf.mxu1  ;;  %3617 = vmatpush1.bf16.msra.mxu0 %v4904_v50  ;;  %v4117_v55 = vcombine.low %v6221_v59, %v6224_v38  ;;  %v4925_v38 = vld [vmem:[%s6745_s1 + $0x810] ss:$8 sps:$4 sm:$0xff]  }
 0x11a   : > { %v6282_v45 = vadd.f32 %v3141_v35, %v3068_v34  ;;  %4442 = vmatpush1.bf16.msra.mxu1 %v4904_v50  ;;  %v3070_v47 = vpop.f32.mrf.mxu0  ;;  %3618 = vmatprep.subr.bf16.mxu0 %v4911_v27  ;;  %v4927_v50 = vld [vmem:[%s6745_s1 + $0x814] ss:$8 sps:$4 sm:$0xff]   ;;  %v6348_v34 = vsel %vm5498_vm5, %v4044_v41, %v828_v19  ;;  %v6352_v35 = vsel %vm5498_vm5, %v4047_v21, %v840_v22  ;;  %v4943_v19 = vld [vmem:[%s6745_s1 + $0x8b0] ss:$8 sps:$4 sm:$0xff]   ;;  %v4946_v21 = vld [vmem:[%s6745_s1 + $0x8a0] ss:$8 sps:$4 sm:$0xff]  }
 0x11b   : > { %v3143_v29 = vpop.f32.mrf.mxu1  ;;  %4427 = vmatprep.subr.bf16.mxu1 %v4911_v27  ;;  %v4119_v27 = vcombine.low %v6305_v62, %v6309_v63  ;;  %v6356_v59 = vsel %vm5498_vm5, %v4048_v23, %v844_v24  ;;  %v4936_v63 = vld [vmem:[%s6745_s1 + $0x8e4] ss:$8 sps:$4 sm:$0xff]   ;;  %v4945_v41 = vld [vmem:[%s6745_s1 + $0x8b4] ss:$8 sps:$4 sm:$0xff]  }
 0x11c   : > { %v6292_v53 = vadd.f32 %v3143_v29, %v3070_v47  ;;  %3511 = vmatmul.mubr.bf16.gmra.mxu0 %v4081_v36  ;;  %v3074_v4 = vpop.f32.mrf.mxu0  ;;  %v4068_v29 = vcombine.high %v6344_v49, %v6348_v34  ;;  %v4951_v22 = vld [vmem:[%s6745_s1 + $0x894] ss:$8 sps:$4 sm:$0xff]   ;;  %v4031_v23 = vld [vmem:[%s5256_s14 + $0x40] sm:$0xee]  ;;  %v4032_v24 = vld [vmem:[%s5256_s14 + $0x48] sm:$0x11] }
 0x11d   : > { %3584 = vmatmul.mubr.bf16.gmra.mxu1 %v4083_v40  ;;  %3619 = vmatpush1.bf16.msra.mxu0 %v4909_v46 }
 0x11e   : > { %4443 = vmatpush1.bf16.msra.mxu1 %v4909_v46  ;;  %3620 = vmatprep.subr.bf16.mxu0 %v4914_v39  ;;  %v3076_v61 = vpop.f32.mrf.mxu0 }
 0x11f   : > { %4428 = vmatprep.subr.bf16.mxu1 %v4914_v39  ;;  %3520 = vmatprep.mubr.bf16.mxu0 %v4100_v51  ;;  %v3147_v20 = vpop.f32.mrf.mxu1  ;;  %v4104_v39 = vcombine.high %v6352_v35, %v6356_v59 }
 0x120   : > { %3593 = vmatprep.mubr.bf16.mxu1 %v4102_v57  ;;  %v3078_v6 = vpop.f32.mrf.mxu0  ;;  %v6331_v26 = vadd.f32 %v3147_v20, %v3074_v4  ;;  %v4948_v20 = vld [vmem:[%s6745_s1 + $0x8a4] ss:$8 sps:$4 sm:$0xff]  }
 0x121   : > { %3621 = vmatpush1.bf16.msra.mxu0 %v4912_v9  ;;  %v3149_v42 = vpop.f32.mrf.mxu1 }
 0x122   : > { %4444 = vmatpush1.bf16.msra.mxu1 %v4912_v9  ;;  %3622 = vmatprep.subr.bf16.mxu0 %v4919_v60  ;;  %v3080_v32 = vpop.f32.mrf.mxu0  ;;  %v6340_v28 = vadd.f32 %v3149_v42, %v3076_v61  ;;  %v4931_v61 = vld [vmem:[%s6745_s1 + $0x8f0] ss:$8 sps:$4 sm:$0xff]   ;;  %v4039_v42 = vld [vmem:[%s5256_s14 + $0x80] sm:$0xee] }
 0x123   : > { %4429 = vmatprep.subr.bf16.mxu1 %v4919_v60  ;;  %v3151_v33 = vpop.f32.mrf.mxu1 }
 0x124   : > { %3521 = vmatmul.mubr.bf16.gmra.mxu0 %v4099_v14  ;;  %v3084_v30 = vpop.f32.mrf.mxu0  ;;  %v6361_v36 = vadd.f32 %v3151_v33, %v3078_v6  ;;  %v4934_v6 = vld [vmem:[%s6745_s1 + $0x8e0] ss:$8 sps:$4 sm:$0xff]   ;;  %v4949_v33 = vld [vmem:[%s6745_s1 + $0x890] ss:$8 sps:$4 sm:$0xff]  }
 0x125   : > { %3594 = vmatmul.mubr.bf16.gmra.mxu1 %v4101_v12  ;;  %3623 = vmatpush1.bf16.msra.mxu0 %v4917_v13  ;;  %v3153_v44 = vpop.f32.mrf.mxu1 }
 0x126   : > { %4445 = vmatpush1.bf16.msra.mxu1 %v4917_v13  ;;  %3624 = vmatprep.subr.bf16.mxu0 %v4922_v7  ;;  %v3086_v40 = vpop.f32.mrf.mxu0  ;;  %v6366_v46 = vadd.f32 %v3153_v44, %v3080_v32 }
 0x127   : > { %4430 = vmatprep.subr.bf16.mxu1 %v4922_v7  ;;  %3530 = vmatprep.mubr.bf16.mxu0 %v4118_v54  ;;  %v3157_v51 = vpop.f32.mrf.mxu1  ;;  %v4937_v7 = vld [vmem:[%s6745_s1 + $0x8d0] ss:$8 sps:$4 sm:$0xff]  }
 0x128   : > { %3603 = vmatprep.mubr.bf16.mxu1 %v4120_v2  ;;  %v3088_v47 = vpop.f32.mrf.mxu0  ;;  %v6375_v52 = vadd.f32 %v3157_v51, %v3084_v30  ;;  %v4942_v2 = vld [vmem:[%s6745_s1 + $0x8c4] ss:$8 sps:$4 sm:$0xff]   ;;  %v4042_v30 = vld [vmem:[%s5256_s14 + $0x98] sm:$0x11] }
 0x129   : > { %3625 = vmatpush1.bf16.msra.mxu0 %v4920_v25  ;;  %v3159_v58 = vpop.f32.mrf.mxu1 }
 0x12a   : > { %4446 = vmatpush1.bf16.msra.mxu1 %v4920_v25  ;;  %3626 = vmatprep.subr.bf16.mxu0 %v4927_v50  ;;  %v3090_v57 = vpop.f32.mrf.mxu0  ;;  %v6380_v4 = vadd.f32 %v3159_v58, %v3086_v40  ;;  %v4033_v25 = vld [vmem:[%s5256_s14 + $0x50] sm:$0xee]  ;;  %v832_v40 = vrot.slane %v4032_v24, 5 }
 0x12b   : > { %4431 = vmatprep.subr.bf16.mxu1 %v4927_v50  ;;  %v3161_v60 = vpop.f32.mrf.mxu1  ;;  %v4034_v50 = vld [vmem:[%s5256_s14 + $0x58] sm:$0x11] }
 0x12c   : > { %3531 = vmatmul.mubr.bf16.gmra.mxu0 %v4117_v55  ;;  %v3094_v9 = vpop.f32.mrf.mxu0  ;;  %v6385_v13 = vadd.f32 %v3161_v60, %v3088_v47  ;;  %v4040_v55 = vld [vmem:[%s5256_s14 + $0x88] sm:$0x11]  ;;  %v836_v44 = vrot.slane %v4034_v50, 5 }
 0x12d   : > { %3604 = vmatmul.mubr.bf16.gmra.mxu1 %v4119_v27  ;;  %3627 = vmatpush1.bf16.msra.mxu0 %v4925_v38  ;;  %v3163_v0 = vpop.f32.mrf.mxu1  ;;  %v4041_v27 = vld [vmem:[%s5256_s14 + $0x90] sm:$0xee]  ;;  %v4954_v47 = vld [vmem:[%s6745_s1 + $0x884] ss:$8 sps:$4 sm:$0xff]  }
 0x12e   : > { %4447 = vmatpush1.bf16.msra.mxu1 %v4925_v38  ;;  %3628 = vmatprep.subr.bf16.mxu0 %v4930_v43  ;;  %v3096_v62 = vpop.f32.mrf.mxu0  ;;  %v6390_v3 = vadd.f32 %v3163_v0, %v3090_v57  ;;  %v4045_v38 = vrot.slane %v4031_v23, 9  ;;  %v4050_v51 = vrot.slane %v4041_v27, 9  ;;  %v4952_v57 = vld [vmem:[%s6745_s1 + $0x880] ss:$8 sps:$4 sm:$0xff]  }
 0x12f   : > { %4432 = vmatprep.subr.bf16.mxu1 %v4930_v43  ;;  %3646 = vmatprep.mubr.bf16.mxu0 %v4068_v29  ;;  %v3167_v14 = vpop.f32.mrf.mxu1  ;;  %v4046_v43 = vrot.slane %v4033_v25, 9  ;;  %v4049_v29 = vrot.slane %v4039_v42, 9 }
 0x130   : > { %3666 = vmatprep.mubr.bf16.mxu1 %v4104_v39  ;;  %v3098_v12 = vpop.f32.mrf.mxu0  ;;  %v6395_v8 = vadd.f32 %v3167_v14, %v3094_v9  ;;  %v848_v39 = vrot.slane %v4040_v55, 5 }
 0x131   : > { %3629 = vmatpush1.bf16.msra.mxu0 %v4928_v17  ;;  %v3169_v15 = vpop.f32.mrf.mxu1  ;;  %v837_v58 = vsel %vm5498_vm5, %v4046_v43, %v836_v44 }
 0x132   : > { %4448 = vmatpush1.bf16.msra.mxu1 %v4928_v17  ;;  %3630 = vmatprep.subr.bf16.mxu0 %v4933_v1  ;;  %v6400_v37 = vadd.f32 %v3169_v15, %v3096_v62  ;;  %v3100_v18 = vpop.f32.mrf.mxu0  ;;  %v852_v17 = vrot.slane %v4042_v30, 5  ;;  %v849_v9 = vsel %vm5498_vm5, %v4049_v29, %v848_v39  ;;  %v4103_v62 = vcombine.low %v6352_v35, %v6356_v59 }
 0x133   : > { %4433 = vmatprep.subr.bf16.mxu1 %v4933_v1  ;;  %v3171_v16 = vpop.f32.mrf.mxu1  ;;  %v833_v1 = vsel %vm5498_vm5, %v4045_v38, %v832_v40 }
 0x134   : > { %v6405_v54 = vadd.f32 %v3171_v16, %v3098_v12  ;;  %v853_v60 = vsel %vm5498_vm5, %v4050_v51, %v852_v17  ;;  %v4085_v59 = vcombine.low %v833_v1, %v837_v58 }
 0x135   : > { %3631 = vmatpush2.bf16.msra.mxu0 %v4931_v61  ;;  %v3173_v32 = vpop.f32.mrf.mxu1  ;;  %v4122_v0 = vcombine.high %v849_v9, %v853_v60  ;;  %v4121_v16 = vcombine.low %v849_v9, %v853_v60 }
 0x136   : > { %4449 = vmatpush2.bf16.msra.mxu1 %v4931_v61  ;;  %3632 = vmatprep.subr.bf16.mxu0 %v4936_v63  ;;  %v6410_v56 = vadd.f32 %v3173_v32, %v3100_v18  ;;  %v4067_v61 = vcombine.low %v6344_v49, %v6348_v34 }
 0x137   : > { %4434 = vmatprep.subr.bf16.mxu1 %v4936_v63  ;;  %v4086_v63 = vcombine.high %v833_v1, %v837_v58 }
 0x139   : > { %3633 = vmatpush2.bf16.msra.mxu0 %v4934_v6 }
 0x13a   : > { %4450 = vmatpush2.bf16.msra.mxu1 %v4934_v6  ;;  %3634 = vmatprep.subr.bf16.mxu0 %v4939_v11 }
 0x13b   : > { %4435 = vmatprep.subr.bf16.mxu1 %v4939_v11 }
 0x13d   : > { %3635 = vmatpush2.bf16.msra.mxu0 %v4937_v7 }
 0x13e   : > { %4451 = vmatpush2.bf16.msra.mxu1 %v4937_v7  ;;  %3636 = vmatprep.subr.bf16.mxu0 %v4942_v2 }
 0x13f   : > { %4436 = vmatprep.subr.bf16.mxu1 %v4942_v2 }
 0x141   : > { %3637 = vmatpush2.bf16.msra.mxu0 %v4940_v5 }
 0x142   : > { %4452 = vmatpush2.bf16.msra.mxu1 %v4940_v5  ;;  %3638 = vmatprep.subr.bf16.mxu0 %v4945_v41 }
 0x143   : > { %4437 = vmatprep.subr.bf16.mxu1 %v4945_v41 }
 0x145   : > { %3639 = vmatpush2.bf16.msra.mxu0 %v4943_v19 }
 0x146   : > { %4453 = vmatpush2.bf16.msra.mxu1 %v4943_v19  ;;  %3640 = vmatprep.subr.bf16.mxu0 %v4948_v20 }
 0x147   : > { %4438 = vmatprep.subr.bf16.mxu1 %v4948_v20 }
 0x149   : > { %3641 = vmatpush2.bf16.msra.mxu0 %v4946_v21 }
 0x14a   : > { %4454 = vmatpush2.bf16.msra.mxu1 %v4946_v21  ;;  %3642 = vmatprep.subr.bf16.mxu0 %v4951_v22 }
 0x14b   : > { %4439 = vmatprep.subr.bf16.mxu1 %v4951_v22 }
 0x14d   : > { %3643 = vmatpush2.bf16.msra.mxu0 %v4949_v33 }
 0x14e   : > { %4455 = vmatpush2.bf16.msra.mxu1 %v4949_v33  ;;  %3644 = vmatprep.subr.bf16.mxu0 %v4954_v47 }
 0x14f   : > { %4440 = vmatprep.subr.bf16.mxu1 %v4954_v47 }
 0x151   : > { %3645 = vmatpush2.bf16.msra.mxu0 %v4952_v57 }
 0x152   : > { %4456 = vmatpush2.bf16.msra.mxu1 %v4952_v57 }
 0x154   : > { %v3210_v14 = vpop.f32.mrf.mxu0  ;;  %3647 = vmatmul.mubr.bf16.vlgmr.msra.gmra.mxu0 %v4067_v61 }
 0x155   : > { %3667 = vmatmul.mubr.bf16.vlgmr.msra.gmra.mxu1 %v4103_v62  ;;  %v3283_v12 = vpop.f32.mrf.mxu1  ;;  %v3211_v6 = vadd.f32 %v3210_v14, %v6263_v48  ;;  %3656 = vmatprep.mubr.bf16.mxu0 %v4086_v63 }
 0x156   : > { %3676 = vmatprep.mubr.bf16.mxu1 %v4122_v0  ;;  %v3212_v10 = vpop.f32.mrf.mxu0 }
 0x157   : > { %v3285_v11 = vpop.f32.mrf.mxu1  ;;  %v3213_v15 = vadd.f32 %v3212_v10, %v6271_v31  ;;  %v6461_v49 = vadd.f32 %v3283_v12, %v3211_v6 }
 0x158   : > { %v3214_v34 = vpop.f32.mrf.mxu0 }
 0x159   : > { %v3287_v35 = vpop.f32.mrf.mxu1  ;;  %v3215_v18 = vadd.f32 %v3214_v34, %v6282_v45  ;;  %v3286_v7 = vadd.f32 %v3285_v11, %v3213_v15 }
 0x15a   : > { %v3216_v2 = vpop.f32.mrf.mxu0 }
 0x15b   : > { %v3289_v32 = vpop.f32.mrf.mxu1  ;;  %v3217_v5 = vadd.f32 %v3216_v2, %v6292_v53  ;;  %v3288_v48 = vadd.f32 %v3287_v35, %v3215_v18 }
 0x15c   : > { %v3220_v41 = vpop.f32.mrf.mxu0  ;;  %3657 = vmatmul.mubr.bf16.gmra.mxu0 %v4085_v59 }
 0x15d   : > { %3677 = vmatmul.mubr.bf16.gmra.mxu1 %v4121_v16  ;;  %v3293_v19 = vpop.f32.mrf.mxu1  ;;  %v3221_v31 = vadd.f32 %v3220_v41, %v6331_v26  ;;  %v6466_v20 = vadd.f32 %v3289_v32, %v3217_v5 }
 0x15e   : > { %v3222_v21 = vpop.f32.mrf.mxu0 }
 0x15f   : > { %v3295_v22 = vpop.f32.mrf.mxu1  ;;  %v3223_v23 = vadd.f32 %v3222_v21, %v6340_v28  ;;  %v3294_v24 = vadd.f32 %v3293_v19, %v3221_v31 }
 0x160   : > { %v3224_v45 = vpop.f32.mrf.mxu0 }
 0x161   : > { %v3297_v25 = vpop.f32.mrf.mxu1  ;;  %v3225_v50 = vadd.f32 %v3224_v45, %v6361_v36  ;;  %v6470_v42 = vadd.f32 %v3295_v22, %v3223_v23 }
 0x162   : > { %v3226_v53 = vpop.f32.mrf.mxu0 }
 0x163   : > { %v3299_v55 = vpop.f32.mrf.mxu1  ;;  %v3227_v27 = vadd.f32 %v3226_v53, %v6366_v46  ;;  %v3298_v30 = vadd.f32 %v3297_v25, %v3225_v50 }
 0x164   : > { %v3230_v33 = vpop.f32.mrf.mxu0 }
 0x165   : > { %v3303_v26 = vpop.f32.mrf.mxu1  ;;  %v3231_v38 = vadd.f32 %v3230_v33, %v6375_v52  ;;  %v6474_v40 = vadd.f32 %v3299_v55, %v3227_v27 }
 0x166   : > { %v3232_v43 = vpop.f32.mrf.mxu0 }
 0x167   : > { %v3305_v28 = vpop.f32.mrf.mxu1  ;;  %v3233_v44 = vadd.f32 %v3232_v43, %v6380_v4  ;;  %v3304_v47 = vadd.f32 %v3303_v26, %v3231_v38 }
 0x168   : > { %v3234_v29 = vpop.f32.mrf.mxu0 }
 0x169   : > { %v3307_v36 = vpop.f32.mrf.mxu1  ;;  %v3235_v39 = vadd.f32 %v3234_v29, %v6385_v13  ;;  %v6478_v51 = vadd.f32 %v3305_v28, %v3233_v44 }
 0x16a   : > { %v3236_v17 = vpop.f32.mrf.mxu0 }
 0x16b   : > { %v3309_v46 = vpop.f32.mrf.mxu1  ;;  %v3237_v57 = vadd.f32 %v3236_v17, %v6390_v3  ;;  %v3308_v1 = vadd.f32 %v3307_v36, %v3235_v39 }
 0x16c   : > { %v3240_v58 = vpop.f32.mrf.mxu0 }
 0x16d   : > { %v3313_v52 = vpop.f32.mrf.mxu1  ;;  %v3241_v9 = vadd.f32 %v3240_v58, %v6395_v8  ;;  %v6482_v60 = vadd.f32 %v3309_v46, %v3237_v57 }
 0x16e   : > { %v3242_v61 = vpop.f32.mrf.mxu0 }
 0x16f   : > { %v3315_v4 = vpop.f32.mrf.mxu1  ;;  %v3243_v62 = vadd.f32 %v3242_v61, %v6400_v37  ;;  %v3314_v63 = vadd.f32 %v3313_v52, %v3241_v9 }
 0x170   : > { %v3244_v0 = vpop.f32.mrf.mxu0 }
 0x171   : > { %v3317_v13 = vpop.f32.mrf.mxu1  ;;  %v3245_v14 = vadd.f32 %v3244_v0, %v6405_v54  ;;  %v6486_v12 = vadd.f32 %v3315_v4, %v3243_v62 }
 0x172   : > { %v3246_v6 = vpop.f32.mrf.mxu0 }
 0x173   : > { %v3319_v3 = vpop.f32.mrf.mxu1  ;;  %v3247_v10 = vadd.f32 %v3246_v6, %v6410_v56  ;;  %v3318_v11 = vadd.f32 %v3317_v13, %v3245_v14 }
 0x175   : > { %v6489_v15 = vadd.f32 %v3319_v3, %v3247_v10 }
 0x194   : > { %v3356_v8 = vpop.f32.mrf.mxu0 }
 0x195   : > { %v3429_v34 = vpop.f32.mrf.mxu1  ;;  %v3357_v35 = vadd.f32 %v3356_v8, %v6461_v49 }
 0x196   : > { %v3358_v59 = vpop.f32.mrf.mxu0 }
 0x197   : > { %v6492_v37 = vpop.f32.mrf.mxu1  ;;  %v6494_v16 = vadd.f32 %v3358_v59, %v3286_v7  ;;  %v3430_v18 = vadd.f32 %v3429_v34, %v3357_v35 }
 0x198   : > { %v3360_v54 = vpop.f32.mrf.mxu0 }
 0x199   : > { %v3433_v2 = vpop.f32.mrf.mxu1  ;;  %v3361_v32 = vadd.f32 %v3360_v54, %v3288_v48 }
 0x19a   : > { %v6496_v5 = vpop.f32.mrf.mxu0 }
 0x19b   : > { %v6498_v41 = vpop.f32.mrf.mxu1  ;;  %v3434_v56 = vadd.f32 %v3433_v2, %v3361_v32 }
 0x19c   : > { %v3366_v19 = vpop.f32.mrf.mxu0 }
 0x19d   : > { %v3439_v31 = vpop.f32.mrf.mxu1  ;;  %v3367_v21 = vadd.f32 %v3366_v19, %v3294_v24 }
 0x19e   : > { %v6500_v22 = vpop.f32.mrf.mxu0 }
 0x19f   : > { %v6502_v49 = vpop.f32.mrf.mxu1  ;;  %v3440_v23 = vadd.f32 %v3439_v31, %v3367_v21 }
 0x1a0   : > { %v3370_v45 = vpop.f32.mrf.mxu0 }
 0x1a1   : > { %v3443_v7 = vpop.f32.mrf.mxu1  ;;  %v3371_v25 = vadd.f32 %v3370_v45, %v3298_v30 }
 0x1a2   : > { %v6504_v50 = vpop.f32.mrf.mxu0 }
 0x1a3   : > { %v6506_v53 = vpop.f32.mrf.mxu1  ;;  %v6508_v48 = vadd.f32 %v3443_v7, %v3371_v25 }
 0x1a4   : > { %v3376_v55 = vpop.f32.mrf.mxu0 }
 0x1a5   : > { %v3449_v27 = vpop.f32.mrf.mxu1  ;;  %v3377_v33 = vadd.f32 %v3376_v55, %v3304_v47 }
 0x1a6   : > { %v6510_v26 = vpop.f32.mrf.mxu0 }
 0x1a7   : > { %v6512_v24 = vpop.f32.mrf.mxu1  ;;  %v6514_v38 = vadd.f32 %v3449_v27, %v3377_v33 }
 0x1a8   : > { %v3380_v43 = vpop.f32.mrf.mxu0 }
 0x1a9   : > { %v3453_v28 = vpop.f32.mrf.mxu1  ;;  %v3381_v44 = vadd.f32 %v3380_v43, %v3308_v1 }
 0x1aa   : > { %v3382_v29 = vpop.f32.mrf.mxu0 }
 0x1ab   : > { %v6516_v30 = vpop.f32.mrf.mxu1  ;;  %v6518_v36 = vadd.f32 %v3453_v28, %v3381_v44 }
 0x1ac   : > { %v3386_v39 = vpop.f32.mrf.mxu0 }
 0x1ad   : > { %v3459_v17 = vpop.f32.mrf.mxu1  ;;  %v3387_v46 = vadd.f32 %v3386_v39, %v3314_v63 }
 0x1ae   : > { %v3388_v57 = vpop.f32.mrf.mxu0 }
 0x1af   : > { %v6520_v58 = vpop.f32.mrf.mxu1  ;;  %v6522_v47 = vadd.f32 %v3459_v17, %v3387_v46 }
 0x1b0   : > { %v3390_v52 = vpop.f32.mrf.mxu0 }
 0x1b1   : > { %v3463_v9 = vpop.f32.mrf.mxu1  ;;  %v3391_v61 = vadd.f32 %v3390_v52, %v3318_v11 }
 0x1b2   : > { %v3392_v62 = vpop.f32.mrf.mxu0 }
 0x1b3   : > { %v6524_v4 = vadd.f32 %v3463_v9, %v3391_v61  ;;  %v6526_v1 = vpop.f32.mrf.mxu1  ;;  %v3363_v9 = vadd.f32 %v6496_v5, %v6466_v20  ;;  %v3369_v61 = vadd.f32 %v6500_v22, %v6470_v42  ;;  %v3379_v20 = vadd.f32 %v6510_v26, %v6478_v51 }
 0x1b4   : > { %v3383_v42 = vadd.f32 %v3382_v29, %v6482_v60 }
 0x1b5   : > { %v3452_v51 = vadd.f32 %v6512_v24, %v3379_v20 }
 0x1b6   : > { %v3456_v60 = vadd.f32 %v6516_v30, %v3383_v42 }
 0x1d4   : > { %v3502_v0 = vpop.f32.mrf.mxu0 }
 0x1d5   : > { %v3575_v13 = vpop.f32.mrf.mxu1  ;;  %v3503_v14 = vadd.f32 %v3502_v0, %v3430_v18  ;;  %v3432_v0 = vadd.f32 %v6492_v37, %v6494_v16  ;;  %v3389_v37 = vadd.f32 %v3388_v57, %v6486_v12 }
 0x1d6   : > { %v3504_v6 = vpop.f32.mrf.mxu0 }
 0x1d7   : > { %v3576_v3 = vadd.f32 %v3575_v13, %v3503_v14  ;;  %v3577_v8 = vpop.f32.mrf.mxu1  ;;  %v3373_v13 = vadd.f32 %v6504_v50, %v6474_v40  ;;  %v3505_v14 = vadd.f32 %v3504_v6, %v3432_v0  ;;  %v3393_v40 = vadd.f32 %v3392_v62, %v6489_v15 }
 0x1d8   : > { %v3506_v10 = vpop.f32.mrf.mxu0  ;;  %v3462_v12 = vadd.f32 %v6520_v58, %v3389_v37 }
 0x1d9   : > { %v3507_v63 = vadd.f32 %v3506_v10, %v3434_v56  ;;  %v3579_v54 = vpop.f32.mrf.mxu1  ;;  %v3446_v5 = vadd.f32 %v6506_v53, %v3373_v13  ;;  %v3578_v0 = vadd.f32 %v3577_v8, %v3505_v14  ;;  %v3466_v15 = vadd.f32 %v6526_v1, %v3393_v40 }
 0x1da   : > { %v3508_v34 = vpop.f32.mrf.mxu0 }
 0x1db   : > { %v3581_v2 = vpop.f32.mrf.mxu1  ;;  %v3580_v26 = vadd.f32 %v3579_v54, %v3507_v63 }
 0x1dc   : > { %v3512_v35 = vpop.f32.mrf.mxu0 }
 0x1dd   : > { %v3513_v59 = vadd.f32 %v3512_v35, %v3440_v23  ;;  %v3585_v32 = vpop.f32.mrf.mxu1 }
 0x1de   : > { %v3514_v11 = vpop.f32.mrf.mxu0 }
 0x1df   : > { %v3587_v19 = vpop.f32.mrf.mxu1 }
 0x1e0   : > { %v3516_v31 = vpop.f32.mrf.mxu0 }
 0x1e1   : > { %v3589_v21 = vpop.f32.mrf.mxu1 }
 0x1e2   : > { %v3518_v45 = vpop.f32.mrf.mxu0 }
 0x1e3   : > { %v3591_v7 = vpop.f32.mrf.mxu1 }
 0x1e4   : > { %v3522_v25 = vpop.f32.mrf.mxu0 }
 0x1e5   : > { %v3595_v55 = vpop.f32.mrf.mxu1  ;;  %v3523_v29 = vadd.f32 %v3522_v25, %v6514_v38 }
 0x1e6   : > { %v3524_v18 = vpop.f32.mrf.mxu0 }
 0x1e7   : > { %v6528_v27 = vpop.f32.mrf.mxu1  ;;  %v3525_v63 = vadd.f32 %v3524_v18, %v3452_v51 }
 0x1e8   : > { %v3526_v33 = vpop.f32.mrf.mxu0 }
 0x1e9   : > { %v6530_v56 = vpop.f32.mrf.mxu1 }
 0x1ea   : > { %v3528_v43 = vpop.f32.mrf.mxu0 }
 0x1eb   : > { %v6532_v28 = vpop.f32.mrf.mxu1 }
 0x1ec   : > { %v3532_v23 = vpop.f32.mrf.mxu0 }
 0x1ed   : > { %v6534_v44 = vpop.f32.mrf.mxu1 }
 0x1ee   : > { %v6536_v39 = vpop.f32.mrf.mxu0 }
 0x1ef   : > { %v6538_v17 = vpop.f32.mrf.mxu1 }
 0x1f0   : > { %6753 = vst [vmem:[#allocation6_spill] sm:$0xff] %v6538_v17  ;;  %v3536_v46 = vpop.f32.mrf.mxu0  ;;  %v3436_v17 = vadd.f32 %v6498_v41, %v3363_v9  ;;  %v3517_v41 = vadd.f32 %v3516_v31, %v6508_v48  ;;  %v3519_v9 = vadd.f32 %v3518_v45, %v3446_v5 }
 0x1f1   : > { %v6540_v52 = vpop.f32.mrf.mxu1 }
 0x1f2   : > { %6754 = vst [vmem:[#allocation7_spill] sm:$0xff] %v6540_v52  ;;  %v6550_v10 = vpop.f32.mrf.mxu0  ;;  %v3442_v52 = vadd.f32 %v6502_v49, %v3369_v61  ;;  %v3509_v50 = vadd.f32 %v3508_v34, %v3436_v17  ;;  %v3586_v34 = vadd.f32 %v3585_v32, %v3513_v59  ;;  %v3590_v24 = vadd.f32 %v3589_v21, %v3517_v41 }
 0x1f3   : > { %v6552_v35 = vpop.f32.mrf.mxu1  ;;  %v3592_v30 = vadd.f32 %v3591_v7, %v3519_v9  ;;  %v3596_v32 = vadd.f32 %v3595_v55, %v3523_v29  ;;  %v3533_v21 = vadd.f32 %v3532_v23, %v6522_v47  ;;  %v3535_v47 = vadd.f32 %v6536_v39, %v3462_v12 }
 0x1f4   : > { %v3515_v6 = vadd.f32 %v3514_v11, %v3442_v52  ;;  %v3582_v8 = vadd.f32 %v3581_v2, %v3509_v50  ;;  %v3598_v52 = vadd.f32 %v6528_v27, %v3525_v63 }
 0x1f5   : > { %v3606_v27 = vadd.f32 %v6534_v44, %v3533_v21 }
 0x1f6   : > { %v3588_v11 = vadd.f32 %v3587_v19, %v3515_v6  ;;  %v3529_v19 = vadd.f32 %v3528_v43, %v3456_v60  ;;  %v3537_v43 = vadd.f32 %v3536_v46, %v6524_v4 }
 0x1f8   : > { %v3602_v37 = vadd.f32 %v6532_v28, %v3529_v19 }
 0x1f9   : > { %v6756_v9 = vld [vmem:[#allocation7_spill] sm:$0xff] }
 0x1fa   : > { %v3610_v28 = vadd.f32 %v6756_v9, %v3537_v43 }
 0x214   : > { %v3648_v16 = vpop.f32.mrf.mxu0 }
 0x215   : > { %v3668_v22 = vpop.f32.mrf.mxu1  ;;  %v6565_v53 = vadd.f32 %v3648_v16, %v3576_v3  ;;  %v3527_v3 = vadd.f32 %v3526_v33, %v6518_v36 }
 0x216   : > { %v3650_v49 = vpop.f32.mrf.mxu0  ;;  %v6604_v40 = vadd.f32 %v3668_v22, %v3596_v32 }
 0x217   : > { %v3670_v61 = vpop.f32.mrf.mxu1  ;;  %v6570_v57 = vadd.f32 %v3650_v49, %v3578_v0  ;;  %v3715_v1 = vmul.f32 %v6565_v53, %v6565_v53  ;;  %v3600_v55 = vadd.f32 %v6530_v56, %v3527_v3  ;;  %v3539_v56 = vadd.f32 %v6550_v10, %v3466_v15  ;;  %v6755_v0 = vld [vmem:[#allocation6_spill] sm:$0xff] }
 0x218   : > { %v3652_v62 = vpop.f32.mrf.mxu0  ;;  %v3608_v41 = vadd.f32 %v6755_v0, %v3535_v47  ;;  %v6613_v49 = vadd.f32 %v3670_v61, %v3598_v52  ;;  %v3723_v15 = vmul.f32 %v6604_v40, %v6604_v40 }
 0x219   : > { %v3672_v48 = vpop.f32.mrf.mxu1  ;;  %v6572_v31 = vadd.f32 %v3652_v62, %v3580_v26  ;;  %v3716_v36 = vmul.f32 %v6570_v57, %v6570_v57  ;;  %v3612_v12 = vadd.f32 %v6552_v35, %v3539_v56 }
 0x21a   : > { %v3654_v54 = vpop.f32.mrf.mxu0  ;;  %v6615_v44 = vadd.f32 %v3672_v48, %v3600_v55 }
 0x21b   : > { %v3674_v58 = vpop.f32.mrf.mxu1  ;;  %v3687_v38 = vadd.f32 %v6572_v31, %v6565_v53  ;;  %v3717_v2 = vmul.f32 %v6572_v31, %v6572_v31  ;;  %v6581_v59 = vadd.f32 %v3654_v54, %v3582_v8 }
 0x21c   : > { %v3658_v45 = vpop.f32.mrf.mxu0  ;;  %v6625_v29 = vadd.f32 %v3674_v58, %v3602_v37  ;;  %v3725_v35 = vmul.f32 %v6615_v44, %v6615_v44 }
 0x21d   : > { %v3678_v7 = vpop.f32.mrf.mxu1  ;;  %v3731_v25 = vadd.f32 %v3717_v2, %v3715_v1  ;;  %v3700_v18 = vadd.f32 %v6581_v59, %v6570_v57  ;;  %v3718_v33 = vmul.f32 %v6581_v59, %v6581_v59  ;;  %v6590_v17 = vadd.f32 %v3658_v45, %v3586_v34 }
 0x21e   : > { %v3660_v23 = vpop.f32.mrf.mxu0  ;;  %v6627_v61 = vadd.f32 %v3678_v7, %v3606_v27 }
 0x21f   : > { %v3680_v13 = vpop.f32.mrf.mxu1  ;;  %v3744_v14 = vadd.f32 %v3718_v33, %v3716_v36  ;;  %v3688_v20 = vadd.f32 %v3687_v38, %v6590_v17  ;;  %v3719_v42 = vmul.f32 %v6590_v17, %v6590_v17  ;;  %v6599_v5 = vadd.f32 %v3660_v23, %v3588_v11 }
 0x220   : > { %v3662_v39 = vpop.f32.mrf.mxu0  ;;  %v3726_v38 = vmul.f32 %v6625_v29, %v6625_v29  ;;  %v3727_v2 = vmul.f32 %v6627_v61, %v6627_v61 }
 0x221   : > { %v3732_v4 = vadd.f32 %v3731_v25, %v3719_v42  ;;  %v3701_v46 = vadd.f32 %v3700_v18, %v6599_v5  ;;  %v3720_v16 = vmul.f32 %v6599_v5, %v6599_v5  ;;  %v6609_v50 = vadd.f32 %v3662_v39, %v3590_v24  ;;  %v3682_v6 = vpop.f32.mrf.mxu1 }
 0x222   : > { %v3664_v10 = vpop.f32.mrf.mxu0  ;;  %v3724_v24 = vmul.f32 %v6613_v49, %v6613_v49  ;;  %v6639_v63 = vadd.f32 %v3682_v6, %v3610_v28 }
 0x223   : > { %v3745_v22 = vadd.f32 %v3744_v14, %v3720_v16  ;;  %v3689_v51 = vadd.f32 %v3688_v20, %v6609_v50  ;;  %v3721_v60 = vmul.f32 %v6609_v50, %v6609_v50  ;;  %v6620_v26 = vadd.f32 %v3664_v10, %v3592_v30  ;;  %v3684_v11 = vpop.f32.mrf.mxu1 }
 0x224   : > { %v6637_v30 = vadd.f32 %v3680_v13, %v3608_v41  ;;  %v6647_v32 = vadd.f32 %v3684_v11, %v3612_v12  ;;  %v3729_v25 = vmul.f32 %v6639_v63, %v6639_v63 }
 0x225   : > { %v3690_v62 = vadd.f32 %v3689_v51, %v6604_v40  ;;  %v3733_v48 = vadd.f32 %v3732_v4, %v3721_v60  ;;  %v3702_v8 = vadd.f32 %v3701_v46, %v6620_v26  ;;  %v3722_v34 = vmul.f32 %v6620_v26, %v6620_v26 }
 0x226   : > { %v3728_v7 = vmul.f32 %v6637_v30, %v6637_v30  ;;  %v3730_v47 = vmul.f32 %v6647_v32, %v6647_v32 }
 0x227   : > { %v3734_v3 = vadd.f32 %v3733_v48, %v3723_v15  ;;  %v3691_v54 = vadd.f32 %v3690_v62, %v6615_v44  ;;  %v3703_v58 = vadd.f32 %v3702_v8, %v6613_v49  ;;  %v3746_v1 = vadd.f32 %v3745_v22, %v3722_v34 }
 0x229   : > { %v3692_v19 = vadd.f32 %v3691_v54, %v6627_v61  ;;  %v3735_v21 = vadd.f32 %v3734_v3, %v3725_v35  ;;  %v3747_v36 = vadd.f32 %v3746_v1, %v3724_v24  ;;  %v3704_v45 = vadd.f32 %v3703_v58, %v6625_v29 }
 0x22b   : > { %v3693_v18 = vadd.f32 %v3692_v19, %v6639_v63  ;;  %v3736_v33 = vadd.f32 %v3735_v21, %v3727_v2  ;;  %v3705_v52 = vadd.f32 %v3704_v45, %v6637_v30  ;;  %v3748_v55 = vadd.f32 %v3747_v36, %v3726_v38 }
 0x22d   : > { %v3694_v43 = vrot.slane %v3693_v18, 4  ;;  %v3737_v23 = vadd.f32 %v3736_v33, %v3729_v25  ;;  %v3706_v13 = vadd.f32 %v3705_v52, %v6647_v32  ;;  %v3749_v14 = vadd.f32 %v3748_v55, %v3728_v7 }
 0x22f   : > { %v3695_v20 = vadd.f32 %v3694_v43, %v3693_v18  ;;  %v3738_v42 = vrot.slane %v3737_v23, 4  ;;  %v3707_v37 = vrot.slane %v3706_v13, 4  ;;  %v3750_v27 = vadd.f32 %v3749_v14, %v3730_v47 }
 0x231   : > { %v3696_v56 = vrot.slane %v3695_v20, 2  ;;  %v3739_v39 = vadd.f32 %v3738_v42, %v3737_v23  ;;  %v3708_v4 = vadd.f32 %v3707_v37, %v3706_v13  ;;  %v3751_v46 = vrot.slane %v3750_v27, 4 }
 0x233   : > { %v3697_v16 = vadd.f32 %v3696_v56, %v3695_v20  ;;  %v3740_v6 = vrot.slane %v3739_v39, 2  ;;  %v3709_v0 = vrot.slane %v3708_v4, 2  ;;  %v3752_v41 = vadd.f32 %v3751_v46, %v3750_v27 }
 0x235   : > { %v3698_v9 = vrot.slane %v3697_v16, 1  ;;  %v3741_v28 = vadd.f32 %v3740_v6, %v3739_v39  ;;  %v3710_v10 = vadd.f32 %v3709_v0, %v3708_v4  ;;  %v3753_v22 = vrot.slane %v3752_v41, 2 }
 0x237   : > { %v3699_v51 = vadd.f32 %v3698_v9, %v3697_v16  ;;  %v3742_v60 = vrot.slane %v3741_v28, 1  ;;  %v3711_v12 = vrot.slane %v3710_v10, 1  ;;  %v3754_v15 = vadd.f32 %v3753_v22, %v3752_v41 }
 0x239   : > { %v3713_v62 = vmul.f32 0.015625, %v3699_v51  ;;  %v3743_v48 = vadd.f32 %v3742_v60, %v3741_v28  ;;  %v3712_v8 = vadd.f32 %v3711_v12, %v3710_v10  ;;  %v3755_v34 = vrot.slane %v3754_v15, 1 }
 0x23b   : > { %v3757_v11 = vmul.f32 0.015625, %v3743_v48  ;;  %v3759_v24 = vmul.f32 %v3713_v62, %v3713_v62  ;;  %v3779_v35 = vsub.f32 %v6639_v63, %v3713_v62  ;;  %v3714_v3 = vmul.f32 0.015625, %v3712_v8 }
 0x23c   : > { %v3756_v54 = vadd.f32 %v3755_v34, %v3754_v15  ;;  %v3765_v58 = vsub.f32 %v6565_v53, %v3713_v62  ;;  %v3767_v1 = vsub.f32 %v6572_v31, %v3713_v62  ;;  %v3769_v38 = vsub.f32 %v6590_v17, %v3713_v62 }
 0x23d   : > { %v3761_v2 = vsub.f32 %v3757_v11, %v3759_v24  ;;  %v3760_v19 = vmul.f32 %v3714_v3, %v3714_v3  ;;  %v3766_v21 = vsub.f32 %v6570_v57, %v3714_v3  ;;  %v3768_v36 = vsub.f32 %v6581_v59, %v3714_v3 }
 0x23e   : > { %v3758_v45 = vmul.f32 0.015625, %v3756_v54  ;;  %v3770_v7 = vsub.f32 %v6599_v5, %v3714_v3  ;;  %v3772_v25 = vsub.f32 %v6620_v26, %v3714_v3  ;;  %v3774_v63 = vsub.f32 %v6613_v49, %v3714_v3 }
 0x23f   : > { %v3763_v18 = vmax.f32 %v3761_v2, 0.0  ;;  %v3776_v53 = vsub.f32 %v6625_v29, %v3714_v3  ;;  %v3778_v31 = vsub.f32 %v6637_v30, %v3714_v3  ;;  %v3780_v17 = vsub.f32 %v6647_v32, %v3714_v3 }
 0x240   : > { %v3762_v33 = vsub.f32 %v3758_v45, %v3760_v19  ;;  %v3771_v52 = vsub.f32 %v6609_v50, %v3713_v62  ;;  %v3773_v57 = vsub.f32 %v6604_v40, %v3713_v62  ;;  %v3775_v59 = vsub.f32 %v6615_v44, %v3713_v62 }
 0x241   : > { %v3781_v55 = vadd.f32 1e-05, %v3763_v18  ;;  %v3777_v5 = vsub.f32 %v6627_v61, %v3713_v62 }
 0x242   : > { %v3764_v26 = vmax.f32 %v3762_v33, 0.0 }
 0x243   : > { %4955 = vrsqrt.f32 %v3781_v55 }
 0x244   : > { %v3782_v49 = vadd.f32 1e-05, %v3764_v26 }
 0x246   : > { %4957 = vrsqrt.f32 %v3782_v49 }
 0x250   : > { %v4956_v47 = vpop.eup %4955 }
 0x251   : > { %v6676_v29 = vmul.f32 %v4956_v47, %v3779_v35  ;;  %v3785_v30 = vmul.f32 %v4956_v47, %v3765_v58  ;;  %v3787_v43 = vmul.f32 %v4956_v47, %v3767_v1  ;;  %v3789_v32 = vmul.f32 %v4956_v47, %v3769_v38 }
 0x252   : > { %v6678_v23 = vmul.f32 %v4956_v47, %v3771_v52  ;;  %v6680_v50 = vmul.f32 %v4956_v47, %v3773_v57  ;;  %v6682_v40 = vmul.f32 %v4956_v47, %v3775_v59  ;;  %v6684_v44 = vmul.f32 %v4956_v47, %v3777_v5 }
 0x253   : > { %v4958_v13 = vpop.eup %4957 }
 0x254   : > { %v3786_v61 = vmul.f32 %v4958_v13, %v3766_v21  ;;  %v3788_v14 = vmul.f32 %v4958_v13, %v3768_v36  ;;  %v3790_v20 = vmul.f32 %v4958_v13, %v3770_v7  ;;  %v3792_v42 = vmul.f32 %v4958_v13, %v3772_v25 }
 0x255   : > { %v3794_v37 = vmul.f32 %v4958_v13, %v3774_v63  ;;  %v3796_v27 = vmul.f32 %v4958_v13, %v3776_v53  ;;  %v3798_v56 = vmul.f32 %v4958_v13, %v3778_v31  ;;  %v3800_v39 = vmul.f32 %v4958_v13, %v3780_v17 }
 0x256   : > { %v4411_v4 = vmul.f32 -1.442695, %v3786_v61  ;;  %v4412_v46 = vmul.f32 -1.442695, %v3788_v14  ;;  %v4413_v16 = vmul.f32 -1.442695, %v3790_v20 }
 0x257   : > { %v4414_v6 = vmul.f32 -1.442695, %v3792_v42  ;;  %v4415_v0 = vmul.f32 -1.442695, %v3794_v37  ;;  %v4416_v41 = vmul.f32 -1.442695, %v3796_v27 }
 0x258   : > { %4959 = vpow2.f32 %v4411_v4  ;;  %v4417_v9 = vmul.f32 -1.442695, %v3798_v56  ;;  %v4418_v28 = vmul.f32 -1.442695, %v3800_v39 }
 0x259   : > { %4961 = vpow2.f32 %v4412_v46 }
 0x25a   : > { %4963 = vpow2.f32 %v4413_v16 }
 0x25b   : > { %4965 = vpow2.f32 %v4414_v6 }
 0x25c   : > { %4967 = vpow2.f32 %v4415_v0 }
 0x25d   : > { %4969 = vpow2.f32 %v4416_v41 }
 0x25e   : > { %4971 = vpow2.f32 %v4417_v9 }
 0x25f   : > { %4973 = vpow2.f32 %v4418_v28 }
 0x265   : > { %v4960_v10 = vpop.eup %4959 }
 0x266   : > { %v4962_v22 = vpop.eup %4961  ;;  %v3825_v51 = vadd.f32 1.0, %v4960_v10 }
 0x267   : > { %v4964_v60 = vpop.eup %4963  ;;  %v3826_v12 = vadd.f32 1.0, %v4962_v22 }
 0x268   : > { %v4966_v15 = vpop.eup %4965  ;;  %v3827_v62 = vadd.f32 1.0, %v4964_v60  ;;  %4975 = vrcp.f32 %v3825_v51 }
 0x269   : > { %v4968_v48 = vpop.eup %4967  ;;  %v3828_v8 = vadd.f32 1.0, %v4966_v15  ;;  %4977 = vrcp.f32 %v3826_v12 }
 0x26a   : > { %v4970_v34 = vpop.eup %4969  ;;  %v3829_v11 = vadd.f32 1.0, %v4968_v48  ;;  %4979 = vrcp.f32 %v3827_v62 }
 0x26b   : > { %v4972_v24 = vpop.eup %4971  ;;  %v3830_v35 = vadd.f32 1.0, %v4970_v34  ;;  %4981 = vrcp.f32 %v3828_v8 }
 0x26c   : > { %v4974_v3 = vpop.eup %4973  ;;  %v3831_v54 = vadd.f32 1.0, %v4972_v24  ;;  %4983 = vrcp.f32 %v3829_v11 }
 0x26d   : > { %v3832_v58 = vadd.f32 1.0, %v4974_v3  ;;  %4985 = vrcp.f32 %v3830_v35 }
 0x26e   : > { %4987 = vrcp.f32 %v3831_v54 }
 0x26f   : > { %4989 = vrcp.f32 %v3832_v58 }
 0x275   : > { %v4976_v1 = vpop.eup %4975 }
 0x276   : > { %v4978_v38 = vpop.eup %4977  ;;  %v3849_v2 = vmul.f32 %v4976_v1, %v3785_v30 }
 0x277   : > { %v4980_v19 = vpop.eup %4979  ;;  %v3850_v21 = vmul.f32 %v4978_v38, %v3787_v43 }
 0x278   : > { %v4982_v36 = vpop.eup %4981  ;;  %v3851_v45 = vmul.f32 %v4980_v19, %v3789_v32  ;;  %3857 = vst [vmem:[%s136_s22] sm:$0xff] %v3849_v2 }
 0x279   : > { %v4984_v7 = vpop.eup %4983  ;;  %v3852_v25 = vmul.f32 %v4982_v36, %v6678_v23  ;;  %3858 = vst [vmem:[%s136_s22 + $0x8] sm:$0xff] %v3850_v21 }
 0x27a   : > { %v4986_v63 = vpop.eup %4985  ;;  %v3853_v18 = vmul.f32 %v4984_v7, %v6680_v50  ;;  %3859 = vst [vmem:[%s136_s22 + $0x10] sm:$0xff] %v3851_v45 }
 0x27b   : > { %v4988_v53 = vpop.eup %4987  ;;  %v3854_v31 = vmul.f32 %v4986_v63, %v6682_v40  ;;  %3860 = vst [vmem:[%s136_s22 + $0x18] sm:$0xff] %v3852_v25 }
 0x27c   : > { %v4990_v17 = vpop.eup %4989  ;;  %v3855_v33 = vmul.f32 %v4988_v53, %v6684_v44  ;;  %3861 = vst [vmem:[%s136_s22 + $0x20] sm:$0xff] %v3853_v18 }
 0x27d   : > { %v3856_v52 = vmul.f32 %v4990_v17, %v6676_v29  ;;  %3862 = vst [vmem:[%s136_s22 + $0x28] sm:$0xff] %v3854_v31 }
 0x27e   : > { %3863 = vst [vmem:[%s136_s22 + $0x30] sm:$0xff] %v3855_v33 }
 0x27f   : > { %3864 = vst [vmem:[%s136_s22 + $0x38] sm:$0xff] %v3856_v52 }
 0x280   : > { %5004 = shalt.err (!%p5001_p3)
}
 0x281   : > { %s5005_s4 = scalar_lea.hbm %s6697_s27, 1024  ;;  %s5009_s7 = scalar_lea.hbm %s6746_s2, 2048 }
 0x282   : > { %p5006_p4 = scmp.ne.s32.totalorder %s6697_s27, %s5005_s4  ;;  %p5010_p9 = scmp.lt.s32.totalorder %s6697_s27, %s6746_s2 }
 0x283   : > { %p5011_p10 = scmp.lt.s32.totalorder %s5009_s7, %s5005_s4 }
 0x284   : > { %p5007_p7 = pnand %p5006_p4, %p5109_p5 }
 0x285   : > { %p5012_p11 = por %p5011_p10, %p5010_p9 }
 0x286   : > { %p5008_p8 = pneg %p5007_p7 }
 0x288   : > { %p5013_p12 = pnand %p5012_p11, %p5008_p8 }
 0x28a   : > { %5016 = shalt.err (!%p5013_p12)
}
 0x28b   : > { %s5054_s16 = smov 128   ;;  %s5055_s17 = smov 8  }
 0x28c   : > { %4458 = dma.vmem_to_hbm [thread:$0]  (%p5109_p5), %s6699_s24, 1024, %s6697_s27, %s6704_s13, %s5054_s16, %s5054_s16, %s5055_s17  }
 0x28d PF: > { %p4464_p13 = scmp.ge.s32.totalorder %s5051_s12, 2  ;;  %s3894_s21 = sand.u32 1, %s5039_s9  }
 0x28e   : > { %s3895_s22 = scalar_lea.sflag [#allocation4], %s3894_s21 }
 0x28f   : > { %p4461_p0 = pnand %p4464_p13, %p5113_p6 }
 0x291   : > { %p4462_p1 = pneg %p4461_p0 }
 0x293   : > { %5034 = dma.done.wait (%p4462_p1), %s3895_s22, 1024  }
 0x294   : > { %5036 = vsyncadd (%p4462_p1), %s3895_s22, 4294966272  ;;  %p12_p2 = scmp.ge.s32.totalorder %s5096_s15, 4   ;;  %s6757_s9 = smov %s5043_s10 }
 0x295   : > { %s6758_s10 = smov %s5047_s11  ;;  %s6759_s11 = smov %s5107_s18 }
 0x296   : > { %s6760_s12 = smov %s5096_s15  ;;  %14 = sbr.rel (!%p12_p2) target bundleno = 3 (0x3), region = 65 }
 0x29b   :  { %3900 = vsyncpa [#allocation4], 1 }
 0x29c   :  { %3902 = vsyncpa [#allocation4 + $0x1], 1 }

</bundles_post_ra>
